<compile_context>
chip_gen: v7x
topology: tpu7x:2x2x1
jax: 0.10.0
libtpu: 0.0.40
codegen_flags: <defaults>
</compile_context>

<pallas_src>
import jax
import jax.numpy as jnp
from jax.experimental import pallas as pl
from jax.experimental.pallas import tpu as pltpu


def rnn_kernel(x_ref, wih_ref, b_ref, whh_ref, wfb_ref, bf_ref,
               out_ref, hcat_ref):
    """Whole-sequence Elman RNN (relu) + output Linear, one kernel call.

    x_ref   : (T*B, I)   time-major input rows (per-step rows are a
                         sublane-aligned contiguous block)
    wih_ref : (I, H)     W_ih^T
    b_ref   : (1, H)     b_ih + b_hh
    whh_ref : (H, H)     W_hh^T
    wfb_ref : (T*H, T*O) block-diag(W_f^T): one output matmul for all steps
    bf_ref  : (1, T*O)   b_f tiled T times
    out_ref : (B, T*O)   lane-packed output (wrapper reshapes to (B,T,O) free)
    hcat_ref: (B, T*H)   VMEM scratch collecting hidden states lane-packed
    """
    TB = x_ref.shape[0]
    H = whh_ref.shape[0]
    B = hcat_ref.shape[0]
    T = TB // B

    # ---- hoisted input projection: ONE MXU pass over all time steps -------
    # (independent of the recurrence, so it is off the serial chain)
    xw = jnp.dot(x_ref[...], wih_ref[...],
                 preferred_element_type=jnp.float32) + b_ref[...]   # (T*B, H)

    # ---- hoisted, loop-invariant row broadcasts of W_hh^T ------------------
    # JAX does not CSE broadcast_in_dim: do these H broadcasts once, not
    # inside the T-times-unrolled loop.
    whh_rows = [jnp.broadcast_to(whh_ref[i:i + 1, :], (B, H)) for i in range(H)]

    # ---- serial recurrence, entirely on the VPU ----------------------------
    # h_t = relu(xw_t + h_{t-1} @ W_hh^T), expressed as H broadcast-FMAs plus
    # a tree-sum so no MXU push/drain latency sits on the carried chain.
    h = jnp.zeros((B, H), jnp.float32)
    for t in range(T):
        xw_t = xw[t * B:(t + 1) * B, :]            # sublane-aligned value slice
        prods = [h[:, i:i + 1] * whh_rows[i] for i in range(H)]
        while len(prods) > 1:                      # tree-sum (depth log2(H))
            nxt = [prods[j] + prods[j + 1] for j in range(0, len(prods) - 1, 2)]
            if len(prods) % 2:
                nxt.append(prods[-1])
            prods = nxt
        h = jnp.maximum(xw_t + prods[0], 0.0)      # relu
        hcat_ref[:, t * H:(t + 1) * H] = h         # lane-slice store, off-chain

    # ---- hoisted output Linear: ONE MXU pass + one lane-packed store -------
    out = jnp.dot(hcat_ref[...], wfb_ref[...],
                  preferred_element_type=jnp.float32) + bf_ref[...]  # (B, T*O)
    out_ref[...] = out.astype(out_ref.dtype)


def pack_params(w_ih, w_hh, b_ih, b_hh, w_f, b_f, seq_len):
    """One-time packing of the fixed PyTorch-layout weights.

    Hoist this out of the per-call path when the module is applied repeatedly
    (per review: per-call weight transposes/casts are un-hidden XLA ops that
    are a measurable fraction of a microsecond-scale kernel's wall time).
    """
    T = int(seq_len)
    H, _ = w_ih.shape          # w_ih: (H, I) PyTorch layout
    O, _ = w_f.shape           # w_f : (O, H)
    f32 = jnp.float32
    wih_T = jnp.transpose(w_ih).astype(f32)                    # (I, H)
    whh_T = jnp.transpose(w_hh).astype(f32)                    # (H, H)
    b = (b_ih + b_hh).astype(f32).reshape(1, H)                # (1, H)
    # Block-diagonal W_f^T so the output Linear over all T steps is a single
    # matmul producing a lane-packed (B, T*O) slab.
    wf_block = jnp.kron(jnp.eye(T, dtype=f32),
                        jnp.transpose(w_f).astype(f32))        # (T*H, T*O)
    bf_rep = jnp.tile(b_f.astype(f32), T).reshape(1, T * O)    # (1, T*O)
    return wih_T, b, whh_T, wf_block, bf_rep


def rnn_forward(x_btI, packed):
    """x_btI: (B, T, I) batch-first, like nn.RNN(batch_first=True).
    Returns (B, T, O) = Linear(RNN(x)[0])."""
    wih_T, b, whh_T, wf_block, bf_rep = packed
    B, T, I = x_btI.shape
    H = whh_T.shape[0]
    O = bf_rep.shape[1] // T

    # Wrapper-side layout plumbing (cheap XLA ops, outside the kernel):
    # time-major rows so each step's xw slice in the kernel is sublane-aligned.
    x_tm = jnp.transpose(x_btI.astype(jnp.float32), (1, 0, 2)).reshape(T * B, I)

    vmem = pl.BlockSpec(memory_space=pltpu.MemorySpace.VMEM)
    out_lane = pl.pallas_call(
        rnn_kernel,
        out_shape=jax.ShapeDtypeStruct((B, T * O), jnp.float32),
        in_specs=[vmem] * 6,
        out_specs=vmem,
        scratch_shapes=[pltpu.VMEM((B, T * H), jnp.float32)],   # lane-packed h
    )(x_tm, wih_T, b, whh_T, wf_block, bf_rep)

    # Free row-major view: (B, T*O) -> (B, T, O).
    return out_lane.reshape(B, T, O)


def rnn_forward_ref(x_btI, w_ih, w_hh, b_ih, b_hh, w_f, b_f):
    """Pure-JAX reference of the PyTorch forward (for correctness check)."""
    B, T, I = x_btI.shape
    H = w_ih.shape[0]
    h = jnp.zeros((B, H), jnp.float32)
    outs = []
    for t in range(T):
        h = jnp.maximum(x_btI[:, t, :] @ w_ih.T + b_ih + h @ w_hh.T + b_hh, 0.0)
        outs.append(h @ w_f.T + b_f)
    return jnp.stack(outs, axis=1)


if __name__ == "__main__":
    # Small shapes consistent with the module: hidden_size=8, QRSU-like
    # symbol/class count of 4/4, batch=32, sequence length 8.
    B, T, I, H, O = 32, 8, 4, 8, 4

    key = jax.random.PRNGKey(0)
    ks = jax.random.split(key, 7)
    bound = 1.0 / jnp.sqrt(H)  # PyTorch default U(-1/sqrt(H), 1/sqrt(H))
    x = jax.random.normal(ks[0], (B, T, I), jnp.float32)
    w_ih = jax.random.uniform(ks[1], (H, I), jnp.float32, -bound, bound)
    w_hh = jax.random.uniform(ks[2], (H, H), jnp.float32, -bound, bound)
    b_ih = jax.random.uniform(ks[3], (H,), jnp.float32, -bound, bound)
    b_hh = jax.random.uniform(ks[4], (H,), jnp.float32, -bound, bound)
    w_f = jax.random.uniform(ks[5], (O, H), jnp.float32, -bound, bound)
    b_f = jax.random.uniform(ks[6], (O,), jnp.float32, -bound, bound)

    # Pack the fixed weights once; reuse across calls.
    packed = pack_params(w_ih, w_hh, b_ih, b_hh, w_f, b_f, T)
    fwd = jax.jit(rnn_forward)

    out = jax.block_until_ready(fwd(x, packed))

    ref = rnn_forward_ref(x, w_ih, w_hh, b_ih, b_hh, w_f, b_f)
    assert out.shape == (B, T, O)
    assert jnp.allclose(out, ref, atol=1e-5, rtol=1e-5)
    print("KERNEL_OK")
</pallas_src>

<mosaic_0001>
module attributes {stable_mosaic.version = 11 : i64} {
  func.func @rnn_kernel(%arg0: memref<256x4xf32, #tpu.memory_space<vmem>>, %arg1: memref<4x8xf32, #tpu.memory_space<vmem>>, %arg2: memref<1x8xf32, #tpu.memory_space<vmem>>, %arg3: memref<8x8xf32, #tpu.memory_space<vmem>>, %arg4: memref<64x32xf32, #tpu.memory_space<vmem>>, %arg5: memref<1x32xf32, #tpu.memory_space<vmem>>, %arg6: memref<32x32xf32, #tpu.memory_space<vmem>>, %arg7: memref<32x64xf32, #tpu.memory_space<vmem>>) attributes {dimension_semantics = [], scalar_prefetch = 0 : i64, scratch_operands = 1 : i64, tpu.core_type = #tpu.core_type<tc>} {
    %c0 = arith.constant 0 : index
    %c0_0 = arith.constant 0 : index
    %0 = vector.load %arg0[%c0, %c0_0] : memref<256x4xf32, #tpu.memory_space<vmem>>, vector<256x4xf32>
    %c0_1 = arith.constant 0 : index
    %c0_2 = arith.constant 0 : index
    %1 = vector.load %arg1[%c0_1, %c0_2] : memref<4x8xf32, #tpu.memory_space<vmem>>, vector<4x8xf32>
    %cst = arith.constant dense<0.000000e+00> : vector<256x8xf32>
    %2 = tpu.matmul %0, %1, %cst {dimension_numbers = #tpu.dot_dimension_numbers<[1], [0], [0], [1], [0, 0, 1, 1], [], []>} : vector<256x4xf32>, vector<4x8xf32>, vector<256x8xf32> -> vector<256x8xf32>
    %c0_3 = arith.constant 0 : index
    %c0_4 = arith.constant 0 : index
    %3 = vector.load %arg2[%c0_3, %c0_4] : memref<1x8xf32, #tpu.memory_space<vmem>>, vector<1x8xf32>
    %4 = vector.broadcast %3 : vector<1x8xf32> to vector<256x8xf32>
    %5 = arith.addf %2, %4 : vector<256x8xf32>
    %c0_5 = arith.constant 0 : index
    %c0_6 = arith.constant 0 : index
    %6 = vector.load %arg3[%c0_5, %c0_6] : memref<8x8xf32, #tpu.memory_space<vmem>>, vector<1x8xf32>
    %7 = vector.shape_cast %6 : vector<1x8xf32> to vector<1x8xf32>
    %8 = vector.broadcast %7 : vector<1x8xf32> to vector<32x8xf32>
    %c1 = arith.constant 1 : index
    %c0_7 = arith.constant 0 : index
    %9 = vector.load %arg3[%c1, %c0_7] : memref<8x8xf32, #tpu.memory_space<vmem>>, vector<1x8xf32>
    %10 = vector.shape_cast %9 : vector<1x8xf32> to vector<1x8xf32>
    %11 = vector.broadcast %10 : vector<1x8xf32> to vector<32x8xf32>
    %c2 = arith.constant 2 : index
    %c0_8 = arith.constant 0 : index
    %12 = vector.load %arg3[%c2, %c0_8] : memref<8x8xf32, #tpu.memory_space<vmem>>, vector<1x8xf32>
    %13 = vector.shape_cast %12 : vector<1x8xf32> to vector<1x8xf32>
    %14 = vector.broadcast %13 : vector<1x8xf32> to vector<32x8xf32>
    %c3 = arith.constant 3 : index
    %c0_9 = arith.constant 0 : index
    %15 = vector.load %arg3[%c3, %c0_9] : memref<8x8xf32, #tpu.memory_space<vmem>>, vector<1x8xf32>
    %16 = vector.shape_cast %15 : vector<1x8xf32> to vector<1x8xf32>
    %17 = vector.broadcast %16 : vector<1x8xf32> to vector<32x8xf32>
    %c4 = arith.constant 4 : index
    %c0_10 = arith.constant 0 : index
    %18 = vector.load %arg3[%c4, %c0_10] : memref<8x8xf32, #tpu.memory_space<vmem>>, vector<1x8xf32>
    %19 = vector.shape_cast %18 : vector<1x8xf32> to vector<1x8xf32>
    %20 = vector.broadcast %19 : vector<1x8xf32> to vector<32x8xf32>
    %c5 = arith.constant 5 : index
    %c0_11 = arith.constant 0 : index
    %21 = vector.load %arg3[%c5, %c0_11] : memref<8x8xf32, #tpu.memory_space<vmem>>, vector<1x8xf32>
    %22 = vector.shape_cast %21 : vector<1x8xf32> to vector<1x8xf32>
    %23 = vector.broadcast %22 : vector<1x8xf32> to vector<32x8xf32>
    %c6 = arith.constant 6 : index
    %c0_12 = arith.constant 0 : index
    %24 = vector.load %arg3[%c6, %c0_12] : memref<8x8xf32, #tpu.memory_space<vmem>>, vector<1x8xf32>
    %25 = vector.shape_cast %24 : vector<1x8xf32> to vector<1x8xf32>
    %26 = vector.broadcast %25 : vector<1x8xf32> to vector<32x8xf32>
    %c7 = arith.constant 7 : index
    %c0_13 = arith.constant 0 : index
    %27 = vector.load %arg3[%c7, %c0_13] : memref<8x8xf32, #tpu.memory_space<vmem>>, vector<1x8xf32>
    %28 = vector.shape_cast %27 : vector<1x8xf32> to vector<1x8xf32>
    %29 = vector.broadcast %28 : vector<1x8xf32> to vector<32x8xf32>
    %cst_14 = arith.constant 0.000000e+00 : f32
    %30 = vector.broadcast %cst_14 : f32 to vector<32x8xf32>
    %31 = vector.extract_strided_slice %5 {offsets = [0, 0], sizes = [32, 8], strides = [1, 1]} : vector<256x8xf32> to vector<32x8xf32>
    %32 = vector.extract_strided_slice %30 {offsets = [0, 0], sizes = [32, 1], strides = [1, 1]} : vector<32x8xf32> to vector<32x1xf32>
    %33 = vector.broadcast %32 : vector<32x1xf32> to vector<32x8xf32>
    %34 = arith.mulf %33, %8 : vector<32x8xf32>
    %35 = vector.extract_strided_slice %30 {offsets = [0, 1], sizes = [32, 1], strides = [1, 1]} : vector<32x8xf32> to vector<32x1xf32>
    %36 = vector.broadcast %35 : vector<32x1xf32> to vector<32x8xf32>
    %37 = arith.mulf %36, %11 : vector<32x8xf32>
    %38 = vector.extract_strided_slice %30 {offsets = [0, 2], sizes = [32, 1], strides = [1, 1]} : vector<32x8xf32> to vector<32x1xf32>
    %39 = vector.broadcast %38 : vector<32x1xf32> to vector<32x8xf32>
    %40 = arith.mulf %39, %14 : vector<32x8xf32>
    %41 = vector.extract_strided_slice %30 {offsets = [0, 3], sizes = [32, 1], strides = [1, 1]} : vector<32x8xf32> to vector<32x1xf32>
    %42 = vector.broadcast %41 : vector<32x1xf32> to vector<32x8xf32>
    %43 = arith.mulf %42, %17 : vector<32x8xf32>
    %44 = vector.extract_strided_slice %30 {offsets = [0, 4], sizes = [32, 1], strides = [1, 1]} : vector<32x8xf32> to vector<32x1xf32>
    %45 = vector.broadcast %44 : vector<32x1xf32> to vector<32x8xf32>
    %46 = arith.mulf %45, %20 : vector<32x8xf32>
    %47 = vector.extract_strided_slice %30 {offsets = [0, 5], sizes = [32, 1], strides = [1, 1]} : vector<32x8xf32> to vector<32x1xf32>
    %48 = vector.broadcast %47 : vector<32x1xf32> to vector<32x8xf32>
    %49 = arith.mulf %48, %23 : vector<32x8xf32>
    %50 = vector.extract_strided_slice %30 {offsets = [0, 6], sizes = [32, 1], strides = [1, 1]} : vector<32x8xf32> to vector<32x1xf32>
    %51 = vector.broadcast %50 : vector<32x1xf32> to vector<32x8xf32>
    %52 = arith.mulf %51, %26 : vector<32x8xf32>
    %53 = vector.extract_strided_slice %30 {offsets = [0, 7], sizes = [32, 1], strides = [1, 1]} : vector<32x8xf32> to vector<32x1xf32>
    %54 = vector.broadcast %53 : vector<32x1xf32> to vector<32x8xf32>
    %55 = arith.mulf %54, %29 : vector<32x8xf32>
    %56 = arith.addf %34, %37 : vector<32x8xf32>
    %57 = arith.addf %40, %43 : vector<32x8xf32>
    %58 = arith.addf %46, %49 : vector<32x8xf32>
    %59 = arith.addf %52, %55 : vector<32x8xf32>
    %60 = arith.addf %56, %57 : vector<32x8xf32>
    %61 = arith.addf %58, %59 : vector<32x8xf32>
    %62 = arith.addf %60, %61 : vector<32x8xf32>
    %63 = arith.addf %31, %62 : vector<32x8xf32>
    %cst_15 = arith.constant 0.000000e+00 : f32
    %64 = vector.broadcast %cst_15 : f32 to vector<32x8xf32>
    %65 = arith.maximumf %63, %64 : vector<32x8xf32>
    %c0_16 = arith.constant 0 : index
    %c0_17 = arith.constant 0 : index
    %66 = vector.load %arg7[%c0_16, %c0_17] : memref<32x64xf32, #tpu.memory_space<vmem>>, vector<32x8xf32>
    tpu.vector_store %arg7[%c0_16, %c0_17], %65 {strides = array<i32>} : memref<32x64xf32, #tpu.memory_space<vmem>>, vector<32x8xf32>,
    %67 = vector.extract_strided_slice %5 {offsets = [32, 0], sizes = [32, 8], strides = [1, 1]} : vector<256x8xf32> to vector<32x8xf32>
    %68 = vector.extract_strided_slice %65 {offsets = [0, 0], sizes = [32, 1], strides = [1, 1]} : vector<32x8xf32> to vector<32x1xf32>
    %69 = vector.broadcast %68 : vector<32x1xf32> to vector<32x8xf32>
    %70 = arith.mulf %69, %8 : vector<32x8xf32>
    %71 = vector.extract_strided_slice %65 {offsets = [0, 1], sizes = [32, 1], strides = [1, 1]} : vector<32x8xf32> to vector<32x1xf32>
    %72 = vector.broadcast %71 : vector<32x1xf32> to vector<32x8xf32>
    %73 = arith.mulf %72, %11 : vector<32x8xf32>
    %74 = vector.extract_strided_slice %65 {offsets = [0, 2], sizes = [32, 1], strides = [1, 1]} : vector<32x8xf32> to vector<32x1xf32>
    %75 = vector.broadcast %74 : vector<32x1xf32> to vector<32x8xf32>
    %76 = arith.mulf %75, %14 : vector<32x8xf32>
    %77 = vector.extract_strided_slice %65 {offsets = [0, 3], sizes = [32, 1], strides = [1, 1]} : vector<32x8xf32> to vector<32x1xf32>
    %78 = vector.broadcast %77 : vector<32x1xf32> to vector<32x8xf32>
    %79 = arith.mulf %78, %17 : vector<32x8xf32>
    %80 = vector.extract_strided_slice %65 {offsets = [0, 4], sizes = [32, 1], strides = [1, 1]} : vector<32x8xf32> to vector<32x1xf32>
    %81 = vector.broadcast %80 : vector<32x1xf32> to vector<32x8xf32>
    %82 = arith.mulf %81, %20 : vector<32x8xf32>
    %83 = vector.extract_strided_slice %65 {offsets = [0, 5], sizes = [32, 1], strides = [1, 1]} : vector<32x8xf32> to vector<32x1xf32>
    %84 = vector.broadcast %83 : vector<32x1xf32> to vector<32x8xf32>
    %85 = arith.mulf %84, %23 : vector<32x8xf32>
    %86 = vector.extract_strided_slice %65 {offsets = [0, 6], sizes = [32, 1], strides = [1, 1]} : vector<32x8xf32> to vector<32x1xf32>
    %87 = vector.broadcast %86 : vector<32x1xf32> to vector<32x8xf32>
    %88 = arith.mulf %87, %26 : vector<32x8xf32>
    %89 = vector.extract_strided_slice %65 {offsets = [0, 7], sizes = [32, 1], strides = [1, 1]} : vector<32x8xf32> to vector<32x1xf32>
    %90 = vector.broadcast %89 : vector<32x1xf32> to vector<32x8xf32>
    %91 = arith.mulf %90, %29 : vector<32x8xf32>
    %92 = arith.addf %70, %73 : vector<32x8xf32>
    %93 = arith.addf %76, %79 : vector<32x8xf32>
    %94 = arith.addf %82, %85 : vector<32x8xf32>
    %95 = arith.addf %88, %91 : vector<32x8xf32>
    %96 = arith.addf %92, %93 : vector<32x8xf32>
    %97 = arith.addf %94, %95 : vector<32x8xf32>
    %98 = arith.addf %96, %97 : vector<32x8xf32>
    %99 = arith.addf %67, %98 : vector<32x8xf32>
    %cst_18 = arith.constant 0.000000e+00 : f32
    %100 = vector.broadcast %cst_18 : f32 to vector<32x8xf32>
    %101 = arith.maximumf %99, %100 : vector<32x8xf32>
    %c0_19 = arith.constant 0 : index
    %c8 = arith.constant 8 : index
    %102 = vector.load %arg7[%c0_19, %c8] : memref<32x64xf32, #tpu.memory_space<vmem>>, vector<32x8xf32>
    tpu.vector_store %arg7[%c0_19, %c8], %101 {strides = array<i32>} : memref<32x64xf32, #tpu.memory_space<vmem>>, vector<32x8xf32>,
    %103 = vector.extract_strided_slice %5 {offsets = [64, 0], sizes = [32, 8], strides = [1, 1]} : vector<256x8xf32> to vector<32x8xf32>
    %104 = vector.extract_strided_slice %101 {offsets = [0, 0], sizes = [32, 1], strides = [1, 1]} : vector<32x8xf32> to vector<32x1xf32>
    %105 = vector.broadcast %104 : vector<32x1xf32> to vector<32x8xf32>
    %106 = arith.mulf %105, %8 : vector<32x8xf32>
    %107 = vector.extract_strided_slice %101 {offsets = [0, 1], sizes = [32, 1], strides = [1, 1]} : vector<32x8xf32> to vector<32x1xf32>
    %108 = vector.broadcast %107 : vector<32x1xf32> to vector<32x8xf32>
    %109 = arith.mulf %108, %11 : vector<32x8xf32>
    %110 = vector.extract_strided_slice %101 {offsets = [0, 2], sizes = [32, 1], strides = [1, 1]} : vector<32x8xf32> to vector<32x1xf32>
    %111 = vector.broadcast %110 : vector<32x1xf32> to vector<32x8xf32>
    %112 = arith.mulf %111, %14 : vector<32x8xf32>
    %113 = vector.extract_strided_slice %101 {offsets = [0, 3], sizes = [32, 1], strides = [1, 1]} : vector<32x8xf32> to vector<32x1xf32>
    %114 = vector.broadcast %113 : vector<32x1xf32> to vector<32x8xf32>
    %115 = arith.mulf %114, %17 : vector<32x8xf32>
    %116 = vector.extract_strided_slice %101 {offsets = [0, 4], sizes = [32, 1], strides = [1, 1]} : vector<32x8xf32> to vector<32x1xf32>
    %117 = vector.broadcast %116 : vector<32x1xf32> to vector<32x8xf32>
    %118 = arith.mulf %117, %20 : vector<32x8xf32>
    %119 = vector.extract_strided_slice %101 {offsets = [0, 5], sizes = [32, 1], strides = [1, 1]} : vector<32x8xf32> to vector<32x1xf32>
    %120 = vector.broadcast %119 : vector<32x1xf32> to vector<32x8xf32>
    %121 = arith.mulf %120, %23 : vector<32x8xf32>
    %122 = vector.extract_strided_slice %101 {offsets = [0, 6], sizes = [32, 1], strides = [1, 1]} : vector<32x8xf32> to vector<32x1xf32>
    %123 = vector.broadcast %122 : vector<32x1xf32> to vector<32x8xf32>
    %124 = arith.mulf %123, %26 : vector<32x8xf32>
    %125 = vector.extract_strided_slice %101 {offsets = [0, 7], sizes = [32, 1], strides = [1, 1]} : vector<32x8xf32> to vector<32x1xf32>
    %126 = vector.broadcast %125 : vector<32x1xf32> to vector<32x8xf32>
    %127 = arith.mulf %126, %29 : vector<32x8xf32>
    %128 = arith.addf %106, %109 : vector<32x8xf32>
    %129 = arith.addf %112, %115 : vector<32x8xf32>
    %130 = arith.addf %118, %121 : vector<32x8xf32>
    %131 = arith.addf %124, %127 : vector<32x8xf32>
    %132 = arith.addf %128, %129 : vector<32x8xf32>
    %133 = arith.addf %130, %131 : vector<32x8xf32>
    %134 = arith.addf %132, %133 : vector<32x8xf32>
    %135 = arith.addf %103, %134 : vector<32x8xf32>
    %cst_20 = arith.constant 0.000000e+00 : f32
    %136 = vector.broadcast %cst_20 : f32 to vector<32x8xf32>
    %137 = arith.maximumf %135, %136 : vector<32x8xf32>
    %c0_21 = arith.constant 0 : index
    %c16 = arith.constant 16 : index
    %138 = vector.load %arg7[%c0_21, %c16] : memref<32x64xf32, #tpu.memory_space<vmem>>, vector<32x8xf32>
    tpu.vector_store %arg7[%c0_21, %c16], %137 {strides = array<i32>} : memref<32x64xf32, #tpu.memory_space<vmem>>, vector<32x8xf32>,
    %139 = vector.extract_strided_slice %5 {offsets = [96, 0], sizes = [32, 8], strides = [1, 1]} : vector<256x8xf32> to vector<32x8xf32>
    %140 = vector.extract_strided_slice %137 {offsets = [0, 0], sizes = [32, 1], strides = [1, 1]} : vector<32x8xf32> to vector<32x1xf32>
    %141 = vector.broadcast %140 : vector<32x1xf32> to vector<32x8xf32>
    %142 = arith.mulf %141, %8 : vector<32x8xf32>
    %143 = vector.extract_strided_slice %137 {offsets = [0, 1], sizes = [32, 1], strides = [1, 1]} : vector<32x8xf32> to vector<32x1xf32>
    %144 = vector.broadcast %143 : vector<32x1xf32> to vector<32x8xf32>
    %145 = arith.mulf %144, %11 : vector<32x8xf32>
    %146 = vector.extract_strided_slice %137 {offsets = [0, 2], sizes = [32, 1], strides = [1, 1]} : vector<32x8xf32> to vector<32x1xf32>
    %147 = vector.broadcast %146 : vector<32x1xf32> to vector<32x8xf32>
    %148 = arith.mulf %147, %14 : vector<32x8xf32>
    %149 = vector.extract_strided_slice %137 {offsets = [0, 3], sizes = [32, 1], strides = [1, 1]} : vector<32x8xf32> to vector<32x1xf32>
    %150 = vector.broadcast %149 : vector<32x1xf32> to vector<32x8xf32>
    %151 = arith.mulf %150, %17 : vector<32x8xf32>
    %152 = vector.extract_strided_slice %137 {offsets = [0, 4], sizes = [32, 1], strides = [1, 1]} : vector<32x8xf32> to vector<32x1xf32>
    %153 = vector.broadcast %152 : vector<32x1xf32> to vector<32x8xf32>
    %154 = arith.mulf %153, %20 : vector<32x8xf32>
    %155 = vector.extract_strided_slice %137 {offsets = [0, 5], sizes = [32, 1], strides = [1, 1]} : vector<32x8xf32> to vector<32x1xf32>
    %156 = vector.broadcast %155 : vector<32x1xf32> to vector<32x8xf32>
    %157 = arith.mulf %156, %23 : vector<32x8xf32>
    %158 = vector.extract_strided_slice %137 {offsets = [0, 6], sizes = [32, 1], strides = [1, 1]} : vector<32x8xf32> to vector<32x1xf32>
    %159 = vector.broadcast %158 : vector<32x1xf32> to vector<32x8xf32>
    %160 = arith.mulf %159, %26 : vector<32x8xf32>
    %161 = vector.extract_strided_slice %137 {offsets = [0, 7], sizes = [32, 1], strides = [1, 1]} : vector<32x8xf32> to vector<32x1xf32>
    %162 = vector.broadcast %161 : vector<32x1xf32> to vector<32x8xf32>
    %163 = arith.mulf %162, %29 : vector<32x8xf32>
    %164 = arith.addf %142, %145 : vector<32x8xf32>
    %165 = arith.addf %148, %151 : vector<32x8xf32>
    %166 = arith.addf %154, %157 : vector<32x8xf32>
    %167 = arith.addf %160, %163 : vector<32x8xf32>
    %168 = arith.addf %164, %165 : vector<32x8xf32>
    %169 = arith.addf %166, %167 : vector<32x8xf32>
    %170 = arith.addf %168, %169 : vector<32x8xf32>
    %171 = arith.addf %139, %170 : vector<32x8xf32>
    %cst_22 = arith.constant 0.000000e+00 : f32
    %172 = vector.broadcast %cst_22 : f32 to vector<32x8xf32>
    %173 = arith.maximumf %171, %172 : vector<32x8xf32>
    %c0_23 = arith.constant 0 : index
    %c24 = arith.constant 24 : index
    %174 = vector.load %arg7[%c0_23, %c24] : memref<32x64xf32, #tpu.memory_space<vmem>>, vector<32x8xf32>
    tpu.vector_store %arg7[%c0_23, %c24], %173 {strides = array<i32>} : memref<32x64xf32, #tpu.memory_space<vmem>>, vector<32x8xf32>,
    %175 = vector.extract_strided_slice %5 {offsets = [128, 0], sizes = [32, 8], strides = [1, 1]} : vector<256x8xf32> to vector<32x8xf32>
    %176 = vector.extract_strided_slice %173 {offsets = [0, 0], sizes = [32, 1], strides = [1, 1]} : vector<32x8xf32> to vector<32x1xf32>
    %177 = vector.broadcast %176 : vector<32x1xf32> to vector<32x8xf32>
    %178 = arith.mulf %177, %8 : vector<32x8xf32>
    %179 = vector.extract_strided_slice %173 {offsets = [0, 1], sizes = [32, 1], strides = [1, 1]} : vector<32x8xf32> to vector<32x1xf32>
    %180 = vector.broadcast %179 : vector<32x1xf32> to vector<32x8xf32>
    %181 = arith.mulf %180, %11 : vector<32x8xf32>
    %182 = vector.extract_strided_slice %173 {offsets = [0, 2], sizes = [32, 1], strides = [1, 1]} : vector<32x8xf32> to vector<32x1xf32>
    %183 = vector.broadcast %182 : vector<32x1xf32> to vector<32x8xf32>
    %184 = arith.mulf %183, %14 : vector<32x8xf32>
    %185 = vector.extract_strided_slice %173 {offsets = [0, 3], sizes = [32, 1], strides = [1, 1]} : vector<32x8xf32> to vector<32x1xf32>
    %186 = vector.broadcast %185 : vector<32x1xf32> to vector<32x8xf32>
    %187 = arith.mulf %186, %17 : vector<32x8xf32>
    %188 = vector.extract_strided_slice %173 {offsets = [0, 4], sizes = [32, 1], strides = [1, 1]} : vector<32x8xf32> to vector<32x1xf32>
    %189 = vector.broadcast %188 : vector<32x1xf32> to vector<32x8xf32>
    %190 = arith.mulf %189, %20 : vector<32x8xf32>
    %191 = vector.extract_strided_slice %173 {offsets = [0, 5], sizes = [32, 1], strides = [1, 1]} : vector<32x8xf32> to vector<32x1xf32>
    %192 = vector.broadcast %191 : vector<32x1xf32> to vector<32x8xf32>
    %193 = arith.mulf %192, %23 : vector<32x8xf32>
    %194 = vector.extract_strided_slice %173 {offsets = [0, 6], sizes = [32, 1], strides = [1, 1]} : vector<32x8xf32> to vector<32x1xf32>
    %195 = vector.broadcast %194 : vector<32x1xf32> to vector<32x8xf32>
    %196 = arith.mulf %195, %26 : vector<32x8xf32>
    %197 = vector.extract_strided_slice %173 {offsets = [0, 7], sizes = [32, 1], strides = [1, 1]} : vector<32x8xf32> to vector<32x1xf32>
    %198 = vector.broadcast %197 : vector<32x1xf32> to vector<32x8xf32>
    %199 = arith.mulf %198, %29 : vector<32x8xf32>
    %200 = arith.addf %178, %181 : vector<32x8xf32>
    %201 = arith.addf %184, %187 : vector<32x8xf32>
    %202 = arith.addf %190, %193 : vector<32x8xf32>
    %203 = arith.addf %196, %199 : vector<32x8xf32>
    %204 = arith.addf %200, %201 : vector<32x8xf32>
    %205 = arith.addf %202, %203 : vector<32x8xf32>
    %206 = arith.addf %204, %205 : vector<32x8xf32>
    %207 = arith.addf %175, %206 : vector<32x8xf32>
    %cst_24 = arith.constant 0.000000e+00 : f32
    %208 = vector.broadcast %cst_24 : f32 to vector<32x8xf32>
    %209 = arith.maximumf %207, %208 : vector<32x8xf32>
    %c0_25 = arith.constant 0 : index
    %c32 = arith.constant 32 : index
    %210 = vector.load %arg7[%c0_25, %c32] : memref<32x64xf32, #tpu.memory_space<vmem>>, vector<32x8xf32>
    tpu.vector_store %arg7[%c0_25, %c32], %209 {strides = array<i32>} : memref<32x64xf32, #tpu.memory_space<vmem>>, vector<32x8xf32>,
    %211 = vector.extract_strided_slice %5 {offsets = [160, 0], sizes = [32, 8], strides = [1, 1]} : vector<256x8xf32> to vector<32x8xf32>
    %212 = vector.extract_strided_slice %209 {offsets = [0, 0], sizes = [32, 1], strides = [1, 1]} : vector<32x8xf32> to vector<32x1xf32>
    %213 = vector.broadcast %212 : vector<32x1xf32> to vector<32x8xf32>
    %214 = arith.mulf %213, %8 : vector<32x8xf32>
    %215 = vector.extract_strided_slice %209 {offsets = [0, 1], sizes = [32, 1], strides = [1, 1]} : vector<32x8xf32> to vector<32x1xf32>
    %216 = vector.broadcast %215 : vector<32x1xf32> to vector<32x8xf32>
    %217 = arith.mulf %216, %11 : vector<32x8xf32>
    %218 = vector.extract_strided_slice %209 {offsets = [0, 2], sizes = [32, 1], strides = [1, 1]} : vector<32x8xf32> to vector<32x1xf32>
    %219 = vector.broadcast %218 : vector<32x1xf32> to vector<32x8xf32>
    %220 = arith.mulf %219, %14 : vector<32x8xf32>
    %221 = vector.extract_strided_slice %209 {offsets = [0, 3], sizes = [32, 1], strides = [1, 1]} : vector<32x8xf32> to vector<32x1xf32>
    %222 = vector.broadcast %221 : vector<32x1xf32> to vector<32x8xf32>
    %223 = arith.mulf %222, %17 : vector<32x8xf32>
    %224 = vector.extract_strided_slice %209 {offsets = [0, 4], sizes = [32, 1], strides = [1, 1]} : vector<32x8xf32> to vector<32x1xf32>
    %225 = vector.broadcast %224 : vector<32x1xf32> to vector<32x8xf32>
    %226 = arith.mulf %225, %20 : vector<32x8xf32>
    %227 = vector.extract_strided_slice %209 {offsets = [0, 5], sizes = [32, 1], strides = [1, 1]} : vector<32x8xf32> to vector<32x1xf32>
    %228 = vector.broadcast %227 : vector<32x1xf32> to vector<32x8xf32>
    %229 = arith.mulf %228, %23 : vector<32x8xf32>
    %230 = vector.extract_strided_slice %209 {offsets = [0, 6], sizes = [32, 1], strides = [1, 1]} : vector<32x8xf32> to vector<32x1xf32>
    %231 = vector.broadcast %230 : vector<32x1xf32> to vector<32x8xf32>
    %232 = arith.mulf %231, %26 : vector<32x8xf32>
    %233 = vector.extract_strided_slice %209 {offsets = [0, 7], sizes = [32, 1], strides = [1, 1]} : vector<32x8xf32> to vector<32x1xf32>
    %234 = vector.broadcast %233 : vector<32x1xf32> to vector<32x8xf32>
    %235 = arith.mulf %234, %29 : vector<32x8xf32>
    %236 = arith.addf %214, %217 : vector<32x8xf32>
    %237 = arith.addf %220, %223 : vector<32x8xf32>
    %238 = arith.addf %226, %229 : vector<32x8xf32>
    %239 = arith.addf %232, %235 : vector<32x8xf32>
    %240 = arith.addf %236, %237 : vector<32x8xf32>
    %241 = arith.addf %238, %239 : vector<32x8xf32>
    %242 = arith.addf %240, %241 : vector<32x8xf32>
    %243 = arith.addf %211, %242 : vector<32x8xf32>
    %cst_26 = arith.constant 0.000000e+00 : f32
    %244 = vector.broadcast %cst_26 : f32 to vector<32x8xf32>
    %245 = arith.maximumf %243, %244 : vector<32x8xf32>
    %c0_27 = arith.constant 0 : index
    %c40 = arith.constant 40 : index
    %246 = vector.load %arg7[%c0_27, %c40] : memref<32x64xf32, #tpu.memory_space<vmem>>, vector<32x8xf32>
    tpu.vector_store %arg7[%c0_27, %c40], %245 {strides = array<i32>} : memref<32x64xf32, #tpu.memory_space<vmem>>, vector<32x8xf32>,
    %247 = vector.extract_strided_slice %5 {offsets = [192, 0], sizes = [32, 8], strides = [1, 1]} : vector<256x8xf32> to vector<32x8xf32>
    %248 = vector.extract_strided_slice %245 {offsets = [0, 0], sizes = [32, 1], strides = [1, 1]} : vector<32x8xf32> to vector<32x1xf32>
    %249 = vector.broadcast %248 : vector<32x1xf32> to vector<32x8xf32>
    %250 = arith.mulf %249, %8 : vector<32x8xf32>
    %251 = vector.extract_strided_slice %245 {offsets = [0, 1], sizes = [32, 1], strides = [1, 1]} : vector<32x8xf32> to vector<32x1xf32>
    %252 = vector.broadcast %251 : vector<32x1xf32> to vector<32x8xf32>
    %253 = arith.mulf %252, %11 : vector<32x8xf32>
    %254 = vector.extract_strided_slice %245 {offsets = [0, 2], sizes = [32, 1], strides = [1, 1]} : vector<32x8xf32> to vector<32x1xf32>
    %255 = vector.broadcast %254 : vector<32x1xf32> to vector<32x8xf32>
    %256 = arith.mulf %255, %14 : vector<32x8xf32>
    %257 = vector.extract_strided_slice %245 {offsets = [0, 3], sizes = [32, 1], strides = [1, 1]} : vector<32x8xf32> to vector<32x1xf32>
    %258 = vector.broadcast %257 : vector<32x1xf32> to vector<32x8xf32>
    %259 = arith.mulf %258, %17 : vector<32x8xf32>
    %260 = vector.extract_strided_slice %245 {offsets = [0, 4], sizes = [32, 1], strides = [1, 1]} : vector<32x8xf32> to vector<32x1xf32>
    %261 = vector.broadcast %260 : vector<32x1xf32> to vector<32x8xf32>
    %262 = arith.mulf %261, %20 : vector<32x8xf32>
    %263 = vector.extract_strided_slice %245 {offsets = [0, 5], sizes = [32, 1], strides = [1, 1]} : vector<32x8xf32> to vector<32x1xf32>
    %264 = vector.broadcast %263 : vector<32x1xf32> to vector<32x8xf32>
    %265 = arith.mulf %264, %23 : vector<32x8xf32>
    %266 = vector.extract_strided_slice %245 {offsets = [0, 6], sizes = [32, 1], strides = [1, 1]} : vector<32x8xf32> to vector<32x1xf32>
    %267 = vector.broadcast %266 : vector<32x1xf32> to vector<32x8xf32>
    %268 = arith.mulf %267, %26 : vector<32x8xf32>
    %269 = vector.extract_strided_slice %245 {offsets = [0, 7], sizes = [32, 1], strides = [1, 1]} : vector<32x8xf32> to vector<32x1xf32>
    %270 = vector.broadcast %269 : vector<32x1xf32> to vector<32x8xf32>
    %271 = arith.mulf %270, %29 : vector<32x8xf32>
    %272 = arith.addf %250, %253 : vector<32x8xf32>
    %273 = arith.addf %256, %259 : vector<32x8xf32>
    %274 = arith.addf %262, %265 : vector<32x8xf32>
    %275 = arith.addf %268, %271 : vector<32x8xf32>
    %276 = arith.addf %272, %273 : vector<32x8xf32>
    %277 = arith.addf %274, %275 : vector<32x8xf32>
    %278 = arith.addf %276, %277 : vector<32x8xf32>
    %279 = arith.addf %247, %278 : vector<32x8xf32>
    %cst_28 = arith.constant 0.000000e+00 : f32
    %280 = vector.broadcast %cst_28 : f32 to vector<32x8xf32>
    %281 = arith.maximumf %279, %280 : vector<32x8xf32>
    %c0_29 = arith.constant 0 : index
    %c48 = arith.constant 48 : index
    %282 = vector.load %arg7[%c0_29, %c48] : memref<32x64xf32, #tpu.memory_space<vmem>>, vector<32x8xf32>
    tpu.vector_store %arg7[%c0_29, %c48], %281 {strides = array<i32>} : memref<32x64xf32, #tpu.memory_space<vmem>>, vector<32x8xf32>,
    %283 = vector.extract_strided_slice %5 {offsets = [224, 0], sizes = [32, 8], strides = [1, 1]} : vector<256x8xf32> to vector<32x8xf32>
    %284 = vector.extract_strided_slice %281 {offsets = [0, 0], sizes = [32, 1], strides = [1, 1]} : vector<32x8xf32> to vector<32x1xf32>
    %285 = vector.broadcast %284 : vector<32x1xf32> to vector<32x8xf32>
    %286 = arith.mulf %285, %8 : vector<32x8xf32>
    %287 = vector.extract_strided_slice %281 {offsets = [0, 1], sizes = [32, 1], strides = [1, 1]} : vector<32x8xf32> to vector<32x1xf32>
    %288 = vector.broadcast %287 : vector<32x1xf32> to vector<32x8xf32>
    %289 = arith.mulf %288, %11 : vector<32x8xf32>
    %290 = vector.extract_strided_slice %281 {offsets = [0, 2], sizes = [32, 1], strides = [1, 1]} : vector<32x8xf32> to vector<32x1xf32>
    %291 = vector.broadcast %290 : vector<32x1xf32> to vector<32x8xf32>
    %292 = arith.mulf %291, %14 : vector<32x8xf32>
    %293 = vector.extract_strided_slice %281 {offsets = [0, 3], sizes = [32, 1], strides = [1, 1]} : vector<32x8xf32> to vector<32x1xf32>
    %294 = vector.broadcast %293 : vector<32x1xf32> to vector<32x8xf32>
    %295 = arith.mulf %294, %17 : vector<32x8xf32>
    %296 = vector.extract_strided_slice %281 {offsets = [0, 4], sizes = [32, 1], strides = [1, 1]} : vector<32x8xf32> to vector<32x1xf32>
    %297 = vector.broadcast %296 : vector<32x1xf32> to vector<32x8xf32>
    %298 = arith.mulf %297, %20 : vector<32x8xf32>
    %299 = vector.extract_strided_slice %281 {offsets = [0, 5], sizes = [32, 1], strides = [1, 1]} : vector<32x8xf32> to vector<32x1xf32>
    %300 = vector.broadcast %299 : vector<32x1xf32> to vector<32x8xf32>
    %301 = arith.mulf %300, %23 : vector<32x8xf32>
    %302 = vector.extract_strided_slice %281 {offsets = [0, 6], sizes = [32, 1], strides = [1, 1]} : vector<32x8xf32> to vector<32x1xf32>
    %303 = vector.broadcast %302 : vector<32x1xf32> to vector<32x8xf32>
    %304 = arith.mulf %303, %26 : vector<32x8xf32>
    %305 = vector.extract_strided_slice %281 {offsets = [0, 7], sizes = [32, 1], strides = [1, 1]} : vector<32x8xf32> to vector<32x1xf32>
    %306 = vector.broadcast %305 : vector<32x1xf32> to vector<32x8xf32>
    %307 = arith.mulf %306, %29 : vector<32x8xf32>
    %308 = arith.addf %286, %289 : vector<32x8xf32>
    %309 = arith.addf %292, %295 : vector<32x8xf32>
    %310 = arith.addf %298, %301 : vector<32x8xf32>
    %311 = arith.addf %304, %307 : vector<32x8xf32>
    %312 = arith.addf %308, %309 : vector<32x8xf32>
    %313 = arith.addf %310, %311 : vector<32x8xf32>
    %314 = arith.addf %312, %313 : vector<32x8xf32>
    %315 = arith.addf %283, %314 : vector<32x8xf32>
    %cst_30 = arith.constant 0.000000e+00 : f32
    %316 = vector.broadcast %cst_30 : f32 to vector<32x8xf32>
    %317 = arith.maximumf %315, %316 : vector<32x8xf32>
    %c0_31 = arith.constant 0 : index
    %c56 = arith.constant 56 : index
    %318 = vector.load %arg7[%c0_31, %c56] : memref<32x64xf32, #tpu.memory_space<vmem>>, vector<32x8xf32>
    tpu.vector_store %arg7[%c0_31, %c56], %317 {strides = array<i32>} : memref<32x64xf32, #tpu.memory_space<vmem>>, vector<32x8xf32>,
    %c0_32 = arith.constant 0 : index
    %c0_33 = arith.constant 0 : index
    %319 = vector.load %arg7[%c0_32, %c0_33] : memref<32x64xf32, #tpu.memory_space<vmem>>, vector<32x64xf32>
    %c0_34 = arith.constant 0 : index
    %c0_35 = arith.constant 0 : index
    %320 = vector.load %arg4[%c0_34, %c0_35] : memref<64x32xf32, #tpu.memory_space<vmem>>, vector<64x32xf32>
    %cst_36 = arith.constant dense<0.000000e+00> : vector<32x32xf32>
    %321 = tpu.matmul %319, %320, %cst_36 {dimension_numbers = #tpu.dot_dimension_numbers<[1], [0], [0], [1], [0, 0, 1, 1], [], []>} : vector<32x64xf32>, vector<64x32xf32>, vector<32x32xf32> -> vector<32x32xf32>
    %c0_37 = arith.constant 0 : index
    %c0_38 = arith.constant 0 : index
    %322 = vector.load %arg5[%c0_37, %c0_38] : memref<1x32xf32, #tpu.memory_space<vmem>>, vector<1x32xf32>
    %323 = vector.broadcast %322 : vector<1x32xf32> to vector<32x32xf32>
    %324 = arith.addf %321, %323 : vector<32x32xf32>
    %c0_39 = arith.constant 0 : index
    %c0_40 = arith.constant 0 : index
    %325 = vector.load %arg6[%c0_39, %c0_40] : memref<32x32xf32, #tpu.memory_space<vmem>>, vector<32x32xf32>
    tpu.vector_store %arg6[%c0_39, %c0_40], %324 {strides = array<i32>} : memref<32x32xf32, #tpu.memory_space<vmem>>, vector<32x32xf32>,
    return
  }
}

</mosaic_0001>

<bundles_post_ra>
// kernel: rnn_forward.1
= control target key start
LH: loop header
LB: loop body
LE: loop exit
PB: predicated region body
PF: predicated region fallthrough
CT: control target
= control target key end

     0   :  { %vm160_vm0 = vcmask 1043456   ;;  %vm63_vm1 = vcmask 31744   ;;  %v2545_v9 = vmov 1   ;;  %v2546_v10 = vmov 0   ;;  %s2553_s19 = smov 8   ;;  %s2554_s28 = smov 16   ;;  %s3692_s1 = inlined_call_operand.vmem [shape: f32[4,8], index: 1, kind: input, shape index: {}]   ;;  %s3693_s0 = inlined_call_operand.vmem [shape: f32[256,4], index: 0, kind: input, shape index: {}]   ;;  %s3694_s3 = inlined_call_operand.vmem [shape: f32[8,8], index: 3, kind: input, shape index: {}]   ;;  %s3695_s2 = inlined_call_operand.vmem [shape: f32[1,8], index: 2, kind: input, shape index: {}]   ;;  %s3696_s4 = inlined_call_operand.vmem [shape: f32[64,32], index: 4, kind: input, shape index: {}]   ;;  %s3697_s5 = inlined_call_operand.vmem [shape: f32[1,32], index: 5, kind: input, shape index: {}]   ;;  %s3698_s6 = inlined_call_operand.vmem [shape: f32[32,32], index: 6, kind: output, shape index: {}]  }
   0x1   :  { %v55_v0 = vld [vmem:[%s3692_s1] sm:$0xf]  ;;  %v24_v2 = vld [vmem:[%s3693_s0 + $0x8] sm:$0xff]  ;;  %v25_v3 = vld [vmem:[%s3693_s0 + $0x10] sm:$0xff]  ;;  %2304 = vset.pattern.permute.xlu1 %v2545_v9  ;;  %2303 = vset.pattern.permute.xlu0 %v2546_v10  ;;  %vm452_vm2 = vcmask 64512   ;;  %v2547_v53 = vmov 3  }
   0x2   :  { %v23_v1 = vld [vmem:[%s3693_s0] sm:$0xff]  ;;  %2198 = vmatprep.subr.msk.mxu0 %vm160_vm0, %v55_v0  ;;  %2286 = vmatprep.subr.msk.mxu1 %vm160_vm0, %v55_v0  ;;  %v26_v4 = vld [vmem:[%s3693_s0 + $0x18] sm:$0xff]  ;;  %v28_v6 = vld [vmem:[%s3693_s0 + $0x28] sm:$0xff]  ;;  %v2548_v54 = vmov 2   ;;  %v2549_v55 = vmov 5   ;;  %v2550_v56 = vmov 4  }
   0x3   :  { %2200 = vmatprep.mubr.msk.f32.mxu0 %vm63_vm1, %v23_v1  ;;  %2199 = vmatpush3.msk.msra.mxu0 %vm160_vm0, %v55_v0  ;;  %v27_v5 = vld [vmem:[%s3693_s0 + $0x20] sm:$0xff]  ;;  %v29_v7 = vld [vmem:[%s3693_s0 + $0x30] sm:$0xff]  ;;  %v30_v8 = vld [vmem:[%s3693_s0 + $0x38] sm:$0xff]  ;;  %v2551_v57 = vmov 7   ;;  %v2552_v58 = vmov 6   ;;  %vm673_vm3 = vcmask 130112  }
   0x4   :  { %2201 = vmatmul.mubr.msk.f32.vlgmr.msra.gmra.mrb[0].mxu0 %vm63_vm1, %v24_v2  ;;  %2287 = vmatpush3.msk.msra.mxu1 %vm160_vm0, %v55_v0  ;;  %v31_v11 = vld [vmem:[%s3693_s0 + $0x40] sm:$0xff]  ;;  %v32_v12 = vld [vmem:[%s3693_s0 + $0x48] sm:$0xff]  ;;  %v33_v61 = vld [vmem:[%s3693_s0 + $0x50] sm:$0xff]  ;;  %vm890_vm4 = vcmask 195712   ;;  %s2556_s16 = smov 40   ;;  %s2557_s17 = smov 48  }
   0x5   :  { %2203 = vmatprep.mubr.msk.f32.mxu0 %vm63_vm1, %v25_v3  ;;  %v2643_v13 = vld [vmem:[%s3694_s3] ss:$0 sm:$0xff]  ;;  %v2648_v14 = vld [vmem:[%s3694_s3 + $0x1] ss:$0 sm:$0xff]  ;;  %v2653_v15 = vld [vmem:[%s3694_s3 + $0x2] ss:$0 sm:$0xff] }
   0x6   :  { %v2658_v16 = vld [vmem:[%s3694_s3 + $0x3] ss:$0 sm:$0xff]  ;;  %v2663_v17 = vld [vmem:[%s3694_s3 + $0x4] ss:$0 sm:$0xff]  ;;  %v2668_v18 = vld [vmem:[%s3694_s3 + $0x5] ss:$0 sm:$0xff] }
   0x7   :  { %v2673_v19 = vld [vmem:[%s3694_s3 + $0x6] ss:$0 sm:$0xff]  ;;  %v2678_v20 = vld [vmem:[%s3694_s3 + $0x7] ss:$0 sm:$0xff]  ;;  %v429_v21 = vmul.f32 0.0, %v2643_v13  ;;  %v430_v22 = vmul.f32 0.0, %v2648_v14 }
   0x8   :  { %2204 = vmatmul.mubr.msk.f32.gmra.mrb[2].mxu0 %vm63_vm1, %v26_v4  ;;  %v431_v23 = vmul.f32 0.0, %v2653_v15  ;;  %v432_v24 = vmul.f32 0.0, %v2658_v16  ;;  %v433_v25 = vmul.f32 0.0, %v2663_v17  ;;  %v434_v26 = vmul.f32 0.0, %v2668_v18  ;;  %v2691_v35 = vld [vmem:[%s3695_s2] ss:$0 sm:$0xff] }
   0x9   :  { %2206 = vmatprep.mubr.msk.f32.mxu0 %vm63_vm1, %v27_v5  ;;  %v435_v27 = vmul.f32 0.0, %v2673_v19  ;;  %v436_v28 = vmul.f32 0.0, %v2678_v20  ;;  %v437_v29 = vadd.f32 %v430_v22, %v429_v21  ;;  %v34_v62 = vld [vmem:[%s3693_s0 + $0x58] sm:$0xff]  ;;  %v35_v5 = vld [vmem:[%s3693_s0 + $0x60] sm:$0xff]  ;;  %s2558_s18 = smov 24   ;;  %s2559_s26 = smov 56  }
   0xa   :  { %v438_v30 = vadd.f32 %v432_v24, %v431_v23  ;;  %v439_v31 = vadd.f32 %v434_v26, %v433_v25  ;;  %vm1107_vm5 = vcmask 261312   ;;  %vm1324_vm6 = vcmask 326912  }
   0xb   :  { %v440_v32 = vadd.f32 %v436_v28, %v435_v27  ;;  %vm1541_vm7 = vcmask 392512   ;;  %vm1758_vm8 = vcmask 458112   ;;  %vm1975_vm9 = vcmask 523712  }
   0xc   :  { %2207 = vmatmul.mubr.msk.f32.gmra.mrb[4].mxu0 %vm63_vm1, %v28_v6  ;;  %v441_v33 = vadd.f32 %v438_v30, %v437_v29  ;;  %v36_v6 = vld [vmem:[%s3693_s0 + $0x68] sm:$0xff]  ;;  %vm1999_vm10 = vcmask 523264   ;;  %vm2097_vm11 = vcmask 261120  }
   0xd   :  { %2209 = vmatprep.mubr.msk.f32.mxu0 %vm63_vm1, %v29_v7  ;;  %v442_v34 = vadd.f32 %v440_v32, %v439_v31 }
   0xf   :  { %v443_v36 = vadd.f32 %v442_v34, %v441_v33 }
  0x10   :  { %2210 = vmatmul.mubr.msk.f32.gmra.mrb[6].mxu0 %vm63_vm1, %v30_v8 }
  0x11   :  { %2212 = vmatprep.mubr.msk.f32.mxu0 %vm63_vm1, %v31_v11 }
  0x14   :  { %2213 = vmatmul.mubr.msk.f32.gmra.mrb[8].mxu0 %vm63_vm1, %v32_v12 }
  0x15   :  { %2215 = vmatprep.mubr.msk.f32.mxu0 %vm63_vm1, %v33_v61 }
  0x18   :  { %2216 = vmatmul.mubr.msk.f32.gmra.mrb[10].mxu0 %vm63_vm1, %v34_v62 }
  0x19   :  { %2218 = vmatprep.mubr.msk.f32.mxu0 %vm63_vm1, %v35_v5 }
  0x1c   :  { %2219 = vmatmul.mubr.msk.f32.gmra.mrb[12].mxu0 %vm63_vm1, %v36_v6 }
  0xd7   :  { %v2202_v37 = vpop.f32.mrb[0].mxu0 }
  0xd8   :  { %v236_v38 = vadd.f32 %v2202_v37, %v2691_v35  ;;  %v230_v39 = vpop.f32.mrb[1].mxu0 }
  0xd9   :  { %v231_v40 = vadd.f32 %v2691_v35, %v230_v39 }
  0xda   :  { %v445_v41 = vadd.f32 %v443_v36, %v236_v38 }
  0xdb   :  { %v444_v42 = vadd.f32 %v443_v36, %v231_v40  ;;  %v2205_v43 = vpop.f32.mrb[2].mxu0 }
  0xdc   :  { %v449_v44 = vmax.f32 %v445_v41, 0.0  ;;  %v246_v45 = vadd.f32 %v2205_v43, %v2691_v35  ;;  %v240_v46 = vpop.f32.mrb[3].mxu0 }
  0xdd   :  { %v448_v47 = vmax.f32 %v444_v42, 0.0  ;;  %v241_v48 = vadd.f32 %v2691_v35, %v240_v46 }
  0xde   :  { %486 = vperm.xlu1 %2304, %v449_v44   ;;  %464 = vperm.xlu0 %2303, %v449_v44   ;;  %v447_v49 = vadd.f32 %v443_v36, %v246_v45  ;;  %454 = vst.msk [vmem:[#allocation2 + $0x8] sm:$0xff] %vm452_vm2, %v449_v44 }
  0xdf   :  { %v446_v50 = vadd.f32 %v443_v36, %v241_v48  ;;  %453 = vst.msk [vmem:[#allocation2] sm:$0xff] %vm452_vm2, %v448_v47  ;;  %v2712_v59 = vpop.f32.mrb[4].mxu0 }
  0xe0   :  { %v451_v51 = vmax.f32 %v447_v49, 0.0  ;;  %v2714_v60 = vpop.f32.mrb[5].mxu0  ;;  %v256_v36 = vadd.f32 %v2712_v59, %v2691_v35 }
  0xe1   :  { %v2699_v52 = vmax.f32 %v446_v50, 0.0 }
  0xe2   :  { %2306 = vset.pattern.permute.xlu1 %v2547_v53  ;;  %2305 = vset.pattern.permute.xlu0 %v2548_v54  ;;  %456 = vst.msk [vmem:[#allocation2 + $0x18] sm:$0xff] %vm452_vm2, %v451_v51 }
  0xe3   :  { %526 = vperm.xlu1 %2306, %v449_v44   ;;  %506 = vperm.xlu0 %2305, %v449_v44   ;;  %455 = vst.msk [vmem:[#allocation2 + $0x10] sm:$0xff] %vm452_vm2, %v2699_v52  ;;  %v2745_v63 = vpop.f32.mrb[6].mxu0 }
  0xe4   :  { %v2751_v0 = vpop.f32.mrb[7].mxu0 }
  0xe7   :  { %2308 = vset.pattern.permute.xlu1 %v2549_v55  ;;  %2307 = vset.pattern.permute.xlu0 %v2550_v56 }
  0xe8   :  { %566 = vperm.xlu1 %2308, %v449_v44   ;;  %546 = vperm.xlu0 %2307, %v449_v44  }
  0xec   :  { %2310 = vset.pattern.permute.xlu1 %v2551_v57  ;;  %2309 = vset.pattern.permute.xlu0 %v2552_v58 }
  0xed   :  { %606 = vperm.xlu1 %2310, %v449_v44   ;;  %586 = vperm.xlu0 %2309, %v449_v44  }
  0xf1   :  { %2313 = vset.pattern.permute.xlu1 %v2548_v54  ;;  %2311 = vset.pattern.permute.xlu0 %v2546_v10 }
  0xf2   :  { %502 = vperm.xlu1 %2313, %v448_v47   ;;  %459 = vperm.xlu0 %2311, %v448_v47  }
  0xf6   :  { %2315 = vset.pattern.permute.xlu1 %v2550_v56  ;;  %2312 = vset.pattern.permute.xlu0 %v2545_v9 }
  0xf7   :  { %542 = vperm.xlu1 %2315, %v448_v47   ;;  %482 = vperm.xlu0 %2312, %v448_v47  }
  0xfb   :  { %2317 = vset.pattern.permute.xlu1 %v2552_v58  ;;  %2314 = vset.pattern.permute.xlu0 %v2547_v53 }
  0xfc   :  { %582 = vperm.xlu1 %2317, %v448_v47   ;;  %522 = vperm.xlu0 %2314, %v448_v47  }
 0x100   :  { %2319 = vset.pattern.permute.xlu1 %v2546_v10  ;;  %2316 = vset.pattern.permute.xlu0 %v2549_v55 }
 0x101   :  { %474 = vperm.xlu1 %2319, %v451_v51   ;;  %562 = vperm.xlu0 %2316, %v448_v47  }
 0x105   :  { %2321 = vset.pattern.permute.xlu1 %v2548_v54  ;;  %2318 = vset.pattern.permute.xlu0 %v2551_v57 }
 0x106   :  { %514 = vperm.xlu1 %2321, %v451_v51   ;;  %602 = vperm.xlu0 %2318, %v448_v47  }
 0x10a   :  { %2323 = vset.pattern.permute.xlu1 %v2550_v56  ;;  %2320 = vset.pattern.permute.xlu0 %v2545_v9 }
 0x10b   :  { %554 = vperm.xlu1 %2323, %v451_v51   ;;  %494 = vperm.xlu0 %2320, %v451_v51  }
 0x10f   :  { %2325 = vset.pattern.permute.xlu1 %v2552_v58  ;;  %2322 = vset.pattern.permute.xlu0 %v2547_v53 }
 0x110   :  { %594 = vperm.xlu1 %2325, %v451_v51   ;;  %534 = vperm.xlu0 %2322, %v451_v51  }
 0x114   :  { %2327 = vset.pattern.permute.xlu1 %v2546_v10  ;;  %2324 = vset.pattern.permute.xlu0 %v2549_v55 }
 0x115   :  { %469 = vperm.xlu1 %2327, %v2699_v52   ;;  %574 = vperm.xlu0 %2324, %v451_v51  }
 0x119   :  { %2328 = vset.pattern.permute.xlu1 %v2545_v9  ;;  %2326 = vset.pattern.permute.xlu0 %v2551_v57 }
 0x11a   :  { %490 = vperm.xlu1 %2328, %v2699_v52   ;;  %614 = vperm.xlu0 %2326, %v451_v51  }
 0x11e   :  { %2329 = vset.pattern.permute.xlu1 %v2548_v54  ;;  %2335 = vset.pattern.permute.xlu0 %v2546_v10 }
 0x11f   :  { %510 = vperm.xlu1 %2329, %v2699_v52  }
 0x123   :  { %2330 = vset.pattern.permute.xlu1 %v2547_v53 }
 0x124   :  { %530 = vperm.xlu1 %2330, %v2699_v52  }
 0x128   :  { %2331 = vset.pattern.permute.xlu1 %v2550_v56 }
 0x129   :  { %550 = vperm.xlu1 %2331, %v2699_v52  }
 0x12d   :  { %2332 = vset.pattern.permute.xlu1 %v2549_v55 }
 0x12e   :  { %570 = vperm.xlu1 %2332, %v2699_v52  }
 0x132   :  { %2333 = vset.pattern.permute.xlu1 %v2552_v58 }
 0x133   :  { %590 = vperm.xlu1 %2333, %v2699_v52  }
 0x137   :  { %2334 = vset.pattern.permute.xlu1 %v2551_v57 }
 0x138   :  { %610 = vperm.xlu1 %2334, %v2699_v52  }
 0x13c   :  { %2336 = vset.pattern.permute.xlu1 %v2545_v9 }
 0x15d   :  { %v487_v1 = vpop.permute.xlu1 %486  ;;  %v465_v2 = vpop.permute.xlu0 %464 }
 0x15e   :  { %v498_v21 = vmul.f32 %v2648_v14, %v487_v1  ;;  %v478_v22 = vmul.f32 %v2643_v13, %v465_v2 }
 0x160   :  { %v622_v30 = vadd.f32 %v498_v21, %v478_v22  ;;  %v251_v21 = vadd.f32 %v2691_v35, %v2714_v60 }
 0x162   :  { %v527_v3 = vpop.permute.xlu1 %526  ;;  %v507_v4 = vpop.permute.xlu0 %506 }
 0x163   :  { %v538_v11 = vmul.f32 %v2658_v16, %v527_v3  ;;  %v518_v12 = vmul.f32 %v2653_v15, %v507_v4 }
 0x165   :  { %v626_v27 = vadd.f32 %v538_v11, %v518_v12 }
 0x167   :  { %v567_v7 = vpop.permute.xlu1 %566  ;;  %v547_v8 = vpop.permute.xlu0 %546  ;;  %v638_v33 = vadd.f32 %v626_v27, %v622_v30 }
 0x168   :  { %v578_v23 = vmul.f32 %v2668_v18, %v567_v7  ;;  %v558_v24 = vmul.f32 %v2663_v17, %v547_v8  ;;  %v2797_v27 = vpop.f32.mrb[8].mxu0 }
 0x16a   :  { %v630_v31 = vadd.f32 %v578_v23, %v558_v24 }
 0x16c   :  { %v607_v25 = vpop.permute.xlu1 %606  ;;  %v587_v26 = vpop.permute.xlu0 %586 }
 0x16d   :  { %v618_v28 = vmul.f32 %v2678_v20, %v607_v25  ;;  %v598_v29 = vmul.f32 %v2673_v19, %v587_v26 }
 0x16f   :  { %v634_v32 = vadd.f32 %v618_v28, %v598_v29  ;;  %v2799_v28 = vpop.f32.mrb[9].mxu0 }
 0x171   :  { %v642_v34 = vadd.f32 %v634_v32, %v630_v31  ;;  %v503_v37 = vpop.permute.xlu1 %502  ;;  %v460_v38 = vpop.permute.xlu0 %459  ;;  %v37_v31 = vld [vmem:[%s3693_s0 + $0x70] sm:$0xff] }
 0x172   :  { %v517_v49 = vmul.f32 %v2653_v15, %v503_v37  ;;  %v477_v52 = vmul.f32 %v2643_v13, %v460_v38  ;;  %2221 = vmatprep.mubr.msk.f32.mxu0 %vm63_vm1, %v37_v31 }
 0x173   :  { %v646_v39 = vadd.f32 %v642_v34, %v638_v33 }
 0x175   :  { %v650_v40 = vadd.f32 %v646_v39, %v256_v36  ;;  %v38_v36 = vld [vmem:[%s3693_s0 + $0x78] sm:$0xff] }
 0x176   :  { %v543_v41 = vpop.permute.xlu1 %542  ;;  %v483_v42 = vpop.permute.xlu0 %482  ;;  %2222 = vmatmul.mubr.msk.f32.gmra.mrb[14].mxu0 %vm63_vm1, %v38_v36 }
 0x177   :  { %v654_v43 = vmax.f32 %v650_v40, 0.0  ;;  %v497_v50 = vmul.f32 %v2648_v14, %v483_v42  ;;  %v557_v62 = vmul.f32 %v2663_v17, %v543_v41 }
 0x179   :  { %703 = vperm.xlu1 %2336, %v654_v43   ;;  %663 = vrot.lane.b32.xlu0 %v654_v43, %s2553_s19  ;;  %v621_v4 = vadd.f32 %v497_v50, %v477_v52  ;;  %v266_v50 = vadd.f32 %v2745_v63, %v2691_v35 }
 0x17b   :  { %v523_v44 = vpop.permute.xlu0 %522  ;;  %v583_v45 = vpop.permute.xlu1 %582 }
 0x17c   :  { %v537_v48 = vmul.f32 %v2658_v16, %v523_v44  ;;  %v597_v1 = vmul.f32 %v2673_v19, %v583_v45 }
 0x17d   :  { %2338 = vset.pattern.permute.xlu1 %v2547_v53  ;;  %683 = vperm.xlu0 %2335, %v654_v43  }
 0x17e   :  { %743 = vperm.xlu1 %2338, %v654_v43   ;;  %v625_v2 = vadd.f32 %v537_v48, %v517_v49 }
 0x180   :  { %v563_v46 = vpop.permute.xlu0 %562  ;;  %v475_v47 = vpop.permute.xlu1 %474  ;;  %v637_v7 = vadd.f32 %v625_v2, %v621_v4 }
 0x181   :  { %2337 = vset.pattern.permute.xlu0 %v2548_v54  ;;  %v577_v51 = vmul.f32 %v2668_v18, %v563_v46  ;;  %v480_v37 = vmul.f32 %v2643_v13, %v475_v47 }
 0x182   :  { %2340 = vset.pattern.permute.xlu1 %v2549_v55  ;;  %723 = vperm.xlu0 %2337, %v654_v43  }
 0x183   :  { %783 = vperm.xlu1 %2340, %v654_v43   ;;  %v629_v5 = vadd.f32 %v577_v51, %v557_v62 }
 0x185   :  { %v515_v59 = vpop.permute.xlu1 %514  ;;  %v603_v61 = vpop.permute.xlu0 %602 }
 0x186   :  { %v617_v3 = vmul.f32 %v2678_v20, %v603_v61  ;;  %2339 = vset.pattern.permute.xlu0 %v2550_v56  ;;  %v520_v32 = vmul.f32 %v2653_v15, %v515_v59 }
 0x187   :  { %2341 = vset.pattern.permute.xlu1 %v2552_v58  ;;  %763 = vperm.xlu0 %2339, %v654_v43  }
 0x188   :  { %v633_v6 = vadd.f32 %v617_v3, %v597_v1  ;;  %803 = vperm.xlu1 %2341, %v654_v43  }
 0x18a   :  { %v641_v8 = vadd.f32 %v633_v6, %v629_v5  ;;  %v555_v11 = vpop.permute.xlu1 %554  ;;  %v495_v12 = vpop.permute.xlu0 %494 }
 0x18b   :  { %2342 = vset.pattern.permute.xlu0 %v2551_v57  ;;  %v500_v33 = vmul.f32 %v2648_v14, %v495_v12  ;;  %v560_v40 = vmul.f32 %v2663_v17, %v555_v11 }
 0x18c   :  { %v645_v22 = vadd.f32 %v641_v8, %v637_v7  ;;  %823 = vperm.xlu0 %2342, %v654_v43   ;;  %2343 = vset.pattern.permute.xlu1 %v2546_v10 }
 0x18d   :  { %v624_v44 = vadd.f32 %v500_v33, %v480_v37 }
 0x18e   :  { %v649_v23 = vadd.f32 %v645_v22, %v251_v21 }
 0x18f   :  { %v595_v24 = vpop.permute.xlu1 %594  ;;  %v535_v25 = vpop.permute.xlu0 %534 }
 0x190   :  { %v653_v26 = vmax.f32 %v649_v23, 0.0  ;;  %2344 = vset.pattern.permute.xlu0 %v2545_v9  ;;  %v540_v60 = vmul.f32 %v2658_v16, %v535_v25  ;;  %v600_v41 = vmul.f32 %v2673_v19, %v595_v24 }
 0x192   :  { %699 = vperm.xlu0 %2344, %v653_v26   ;;  %661 = vrot.lane.b32.xlu1 %v653_v26, %s2553_s19  ;;  %v628_v42 = vadd.f32 %v540_v60, %v520_v32  ;;  %v2849_v32 = vpop.f32.mrb[10].mxu0 }
 0x194   :  { %v470_v29 = vpop.permute.xlu1 %469  ;;  %v575_v30 = vpop.permute.xlu0 %574  ;;  %v640_v47 = vadd.f32 %v628_v42, %v624_v44 }
 0x195   :  { %v580_v34 = vmul.f32 %v2668_v18, %v575_v30  ;;  %v479_v6 = vmul.f32 %v2643_v13, %v470_v29  ;;  %v261_v29 = vadd.f32 %v2691_v35, %v2751_v0  ;;  %v2852_v0 = vpop.f32.mrb[11].mxu0 }
 0x196   :  { %2346 = vset.pattern.permute.xlu0 %v2547_v53  ;;  %679 = vperm.xlu1 %2343, %v653_v26  }
 0x197   :  { %739 = vperm.xlu0 %2346, %v653_v26   ;;  %v632_v45 = vadd.f32 %v580_v34, %v560_v40 }
 0x199   :  { %v491_v38 = vpop.permute.xlu1 %490  ;;  %v615_v39 = vpop.permute.xlu0 %614 }
 0x19a   :  { %v620_v43 = vmul.f32 %v2678_v20, %v615_v39  ;;  %2345 = vset.pattern.permute.xlu1 %v2548_v54  ;;  %v499_v4 = vmul.f32 %v2648_v14, %v491_v38 }
 0x19b   :  { %2348 = vset.pattern.permute.xlu0 %v2549_v55  ;;  %719 = vperm.xlu1 %2345, %v653_v26  }
 0x19c   :  { %v636_v46 = vadd.f32 %v620_v43, %v600_v41  ;;  %779 = vperm.xlu0 %2348, %v653_v26   ;;  %v623_v22 = vadd.f32 %v499_v4, %v479_v6  ;;  %v39_v43 = vld [vmem:[%s3693_s0 + $0x80] sm:$0xff]  ;;  %v276_v4 = vadd.f32 %v2797_v27, %v2691_v35 }
 0x19d   :  { %2224 = vmatprep.mubr.msk.f32.mxu0 %vm63_vm1, %v39_v43 }
 0x19e   :  { %v644_v48 = vadd.f32 %v636_v46, %v632_v45  ;;  %v511_v49 = vpop.permute.xlu1 %510 }
 0x19f   :  { %2347 = vset.pattern.permute.xlu1 %v2550_v56  ;;  %v519_v3 = vmul.f32 %v2653_v15, %v511_v49 }
 0x1a0   :  { %v648_v51 = vadd.f32 %v644_v48, %v640_v47  ;;  %759 = vperm.xlu1 %2347, %v653_v26   ;;  %2352 = vset.pattern.permute.xlu0 %v2545_v9  ;;  %v40_v47 = vld [vmem:[%s3693_s0 + $0x88] sm:$0xff] }
 0x1a1   :  { %2225 = vmatmul.mubr.msk.f32.gmra.mrb[16].mxu0 %vm63_vm1, %v40_v47 }
 0x1a2   :  { %v652_v52 = vadd.f32 %v648_v51, %v266_v50 }
 0x1a3   :  { %v531_v59 = vpop.permute.xlu1 %530 }
 0x1a4   :  { %v656_v61 = vmax.f32 %v652_v52, 0.0  ;;  %2349 = vset.pattern.permute.xlu1 %v2552_v58  ;;  %v539_v2 = vmul.f32 %v2658_v16, %v531_v59 }
 0x1a5   :  { %799 = vperm.xlu1 %2349, %v653_v26  }
 0x1a6   :  { %667 = vrot.lane.b32.xlu0 %v656_v61, %s2553_s19  ;;  %v627_v7 = vadd.f32 %v539_v2, %v519_v3 }
 0x1a8   :  { %v551_v62 = vpop.permute.xlu1 %550  ;;  %v639_v25 = vadd.f32 %v627_v7, %v623_v22 }
 0x1a9   :  { %2350 = vset.pattern.permute.xlu1 %v2551_v57  ;;  %v559_v11 = vmul.f32 %v2663_v17, %v551_v62 }
 0x1aa   :  { %819 = vperm.xlu1 %2350, %v653_v26   ;;  %711 = vperm.xlu0 %2352, %v656_v61  }
 0x1ad   :  { %v571_v63 = vpop.permute.xlu1 %570 }
 0x1ae   :  { %2351 = vset.pattern.permute.xlu1 %v2546_v10  ;;  %2354 = vset.pattern.permute.xlu0 %v2547_v53  ;;  %v579_v5 = vmul.f32 %v2668_v18, %v571_v63 }
 0x1af   :  { %691 = vperm.xlu1 %2351, %v656_v61   ;;  %751 = vperm.xlu0 %2354, %v656_v61  }
 0x1b0   :  { %v631_v23 = vadd.f32 %v579_v5, %v559_v11 }
 0x1b2   :  { %v591_v1 = vpop.permute.xlu1 %590 }
 0x1b3   :  { %2353 = vset.pattern.permute.xlu1 %v2548_v54  ;;  %2356 = vset.pattern.permute.xlu0 %v2549_v55  ;;  %v599_v12 = vmul.f32 %v2673_v19, %v591_v1 }
 0x1b4   :  { %731 = vperm.xlu1 %2353, %v656_v61   ;;  %791 = vperm.xlu0 %2356, %v656_v61  }
 0x1b7   :  { %v611_v8 = vpop.permute.xlu1 %610 }
 0x1b8   :  { %v619_v21 = vmul.f32 %v2678_v20, %v611_v8  ;;  %2355 = vset.pattern.permute.xlu1 %v2550_v56  ;;  %2365 = vset.pattern.permute.xlu0 %v2552_v58 }
 0x1b9   :  { %771 = vperm.xlu1 %2355, %v656_v61  }
 0x1ba   :  { %v635_v24 = vadd.f32 %v619_v21, %v599_v12 }
 0x1bc   :  { %v643_v26 = vadd.f32 %v635_v24, %v631_v23 }
 0x1bd   :  { %2357 = vset.pattern.permute.xlu1 %v2552_v58 }
 0x1be   :  { %v647_v30 = vadd.f32 %v643_v26, %v639_v25  ;;  %811 = vperm.xlu1 %2357, %v656_v61  }
 0x1c0   :  { %v651_v60 = vadd.f32 %v647_v30, %v261_v29 }
 0x1c2   :  { %v655_v31 = vmax.f32 %v651_v60, 0.0  ;;  %2358 = vset.pattern.permute.xlu1 %v2551_v57 }
 0x1c3   :  { %831 = vperm.xlu1 %2358, %v656_v61  }
 0x1c4   :  { %807 = vperm.xlu0 %2365, %v655_v31  }
 0x1c7   :  { %665 = vrot.lane.b32.xlu1 %v655_v31, %s2553_s19 }
 0x1c8   :  { %2359 = vset.pattern.permute.xlu1 %v2546_v10  ;;  %2370 = vset.pattern.permute.xlu0 %v2547_v53 }
 0x1cb   :  { %687 = vperm.xlu1 %2359, %v655_v31  }
 0x1cf   :  { %2360 = vset.pattern.permute.xlu1 %v2545_v9 }
 0x1d0   :  { %707 = vperm.xlu1 %2360, %v655_v31  }
 0x1d4   :  { %2361 = vset.pattern.permute.xlu1 %v2548_v54 }
 0x1d5   :  { %727 = vperm.xlu1 %2361, %v655_v31  }
 0x1d9   :  { %2362 = vset.pattern.permute.xlu1 %v2547_v53 }
 0x1da   :  { %747 = vperm.xlu1 %2362, %v655_v31  }
 0x1de   :  { %2363 = vset.pattern.permute.xlu1 %v2550_v56 }
 0x1df   :  { %767 = vperm.xlu1 %2363, %v655_v31  }
 0x1e3   :  { %2364 = vset.pattern.permute.xlu1 %v2549_v55 }
 0x1e4   :  { %787 = vperm.xlu1 %2364, %v655_v31  }
 0x1e8   :  { %2366 = vset.pattern.permute.xlu1 %v2551_v57 }
 0x1e9   :  { %827 = vperm.xlu1 %2366, %v655_v31  }
 0x1eb   :  { %v664_v33 = vpop.permute.xlu0 %663 }
 0x1ec   :  { %675 = vst.msk [vmem:[#allocation2 + $0x8] sm:$0xff] %vm673_vm3, %v664_v33 }
 0x1ed   :  { %2367 = vset.pattern.permute.xlu1 %v2546_v10 }
 0x1f8   :  { %v704_v34 = vpop.permute.xlu1 %703 }
 0x1f9   :  { %v715_v48 = vmul.f32 %v2648_v14, %v704_v34 }
 0x1fc   :  { %v684_v36 = vpop.permute.xlu0 %683 }
 0x1fd   :  { %v744_v37 = vpop.permute.xlu1 %743  ;;  %v695_v44 = vmul.f32 %v2643_v13, %v684_v36 }
 0x1fe   :  { %v755_v45 = vmul.f32 %v2658_v16, %v744_v37 }
 0x1ff   :  { %v839_v62 = vadd.f32 %v715_v48, %v695_v44  ;;  %v271_v44 = vadd.f32 %v2691_v35, %v2799_v28 }
 0x201   :  { %v724_v38 = vpop.permute.xlu0 %723 }
 0x202   :  { %v784_v39 = vpop.permute.xlu1 %783  ;;  %v735_v42 = vmul.f32 %v2653_v15, %v724_v38 }
 0x203   :  { %v795_v52 = vmul.f32 %v2668_v18, %v784_v39 }
 0x204   :  { %v843_v51 = vadd.f32 %v755_v45, %v735_v42 }
 0x206   :  { %v764_v40 = vpop.permute.xlu0 %763  ;;  %v855_v2 = vadd.f32 %v843_v51, %v839_v62  ;;  %v42_v62 = vld [vmem:[%s3693_s0 + $0x98] sm:$0xff] }
 0x207   :  { %v804_v41 = vpop.permute.xlu1 %803  ;;  %v775_v46 = vmul.f32 %v2663_v17, %v764_v40 }
 0x208   :  { %v815_v59 = vmul.f32 %v2673_v19, %v804_v41 }
 0x209   :  { %v847_v63 = vadd.f32 %v795_v52, %v775_v46  ;;  %v2901_v52 = vpop.f32.mrb[12].mxu0 }
 0x20a   :  { %v2903_v28 = vpop.f32.mrb[13].mxu0 }
 0x20b   :  { %v662_v49 = vpop.permute.xlu1 %661  ;;  %v824_v50 = vpop.permute.xlu0 %823 }
 0x20c   :  { %674 = vst.msk [vmem:[#allocation2] sm:$0xff] %vm673_vm3, %v662_v49  ;;  %v835_v61 = vmul.f32 %v2678_v20, %v824_v50 }
 0x20e   :  { %v851_v1 = vadd.f32 %v835_v61, %v815_v59  ;;  %v41_v59 = vld [vmem:[%s3693_s0 + $0x90] sm:$0xff] }
 0x20f   :  { %2227 = vmatprep.mubr.msk.f32.mxu1 %vm63_vm1, %v41_v59 }
 0x210   :  { %v859_v3 = vadd.f32 %v851_v1, %v847_v63  ;;  %2228 = vmatmul.mubr.msk.f32.vlgmr.msra.gmra.mrb[0].mxu1 %vm63_vm1, %v42_v62 }
 0x211   :  { %v700_v5 = vpop.permute.xlu0 %699 }
 0x212   :  { %v863_v6 = vadd.f32 %v859_v3, %v855_v2  ;;  %v714_v60 = vmul.f32 %v2648_v14, %v700_v5 }
 0x214   :  { %v867_v7 = vadd.f32 %v863_v6, %v276_v4 }
 0x215   :  { %v680_v8 = vpop.permute.xlu1 %679 }
 0x216   :  { %v871_v11 = vmax.f32 %v867_v7, 0.0  ;;  %v740_v12 = vpop.permute.xlu0 %739  ;;  %v694_v26 = vmul.f32 %v2643_v13, %v680_v8 }
 0x217   :  { %v754_v29 = vmul.f32 %v2658_v16, %v740_v12 }
 0x218   :  { %960 = vperm.xlu0 %2370, %v871_v11   ;;  %880 = vrot.lane.b32.xlu1 %v871_v11, %s2554_s28  ;;  %v838_v38 = vadd.f32 %v714_v60, %v694_v26  ;;  %v286_v26 = vadd.f32 %v2849_v32, %v2691_v35 }
 0x21a   :  { %v720_v21 = vpop.permute.xlu1 %719 }
 0x21b   :  { %v780_v22 = vpop.permute.xlu0 %779  ;;  %v734_v25 = vmul.f32 %v2653_v15, %v720_v21 }
 0x21c   :  { %2373 = vset.pattern.permute.xlu0 %v2552_v58  ;;  %900 = vperm.xlu1 %2367, %v871_v11   ;;  %v794_v34 = vmul.f32 %v2668_v18, %v780_v22 }
 0x21d   :  { %1020 = vperm.xlu0 %2373, %v871_v11   ;;  %v842_v33 = vadd.f32 %v754_v29, %v734_v25 }
 0x21f   :  { %v760_v23 = vpop.permute.xlu1 %759  ;;  %v668_v24 = vpop.permute.xlu0 %667  ;;  %v854_v41 = vadd.f32 %v842_v33, %v838_v38 }
 0x220   :  { %677 = vst.msk [vmem:[#allocation2 + $0x18] sm:$0xff] %vm673_vm3, %v668_v24  ;;  %2368 = vset.pattern.permute.xlu1 %v2545_v9  ;;  %v774_v30 = vmul.f32 %v2663_v17, %v760_v23 }
 0x221   :  { %920 = vperm.xlu1 %2368, %v871_v11   ;;  %2375 = vset.pattern.permute.xlu0 %v2546_v10 }
 0x222   :  { %v846_v39 = vadd.f32 %v794_v34, %v774_v30 }
 0x224   :  { %v800_v27 = vpop.permute.xlu1 %799 }
 0x225   :  { %2369 = vset.pattern.permute.xlu1 %v2548_v54  ;;  %v814_v36 = vmul.f32 %v2673_v19, %v800_v27 }
 0x226   :  { %940 = vperm.xlu1 %2369, %v871_v11  }
 0x229   :  { %v820_v31 = vpop.permute.xlu1 %819  ;;  %v712_v47 = vpop.permute.xlu0 %711 }
 0x22a   :  { %v834_v37 = vmul.f32 %v2678_v20, %v820_v31  ;;  %2371 = vset.pattern.permute.xlu1 %v2550_v56  ;;  %v717_v5 = vmul.f32 %v2648_v14, %v712_v47 }
 0x22b   :  { %980 = vperm.xlu1 %2371, %v871_v11  }
 0x22c   :  { %v850_v40 = vadd.f32 %v834_v37, %v814_v36 }
 0x22e   :  { %v858_v42 = vadd.f32 %v850_v40, %v846_v39  ;;  %v692_v43 = vpop.permute.xlu1 %691  ;;  %v752_v51 = vpop.permute.xlu0 %751 }
 0x22f   :  { %2372 = vset.pattern.permute.xlu1 %v2549_v55  ;;  %v697_v2 = vmul.f32 %v2643_v13, %v692_v43  ;;  %v757_v3 = vmul.f32 %v2658_v16, %v752_v51 }
 0x230   :  { %v862_v45 = vadd.f32 %v858_v42, %v854_v41  ;;  %1000 = vperm.xlu1 %2372, %v871_v11  }
 0x231   :  { %v841_v21 = vadd.f32 %v717_v5, %v697_v2 }
 0x232   :  { %v866_v46 = vadd.f32 %v862_v45, %v271_v44 }
 0x233   :  { %v732_v48 = vpop.permute.xlu1 %731  ;;  %v792_v1 = vpop.permute.xlu0 %791 }
 0x234   :  { %v870_v49 = vmax.f32 %v866_v46, 0.0  ;;  %2374 = vset.pattern.permute.xlu1 %v2551_v57  ;;  %v737_v63 = vmul.f32 %v2653_v15, %v732_v48  ;;  %v797_v6 = vmul.f32 %v2668_v18, %v792_v1 }
 0x235   :  { %1040 = vperm.xlu1 %2374, %v871_v11  }
 0x236   :  { %878 = vrot.lane.b32.xlu0 %v870_v49, %s2554_s28  ;;  %v845_v8 = vadd.f32 %v757_v3, %v737_v63  ;;  %v43_v3 = vld [vmem:[%s3693_s0 + $0xa0] sm:$0xff] }
 0x237   :  { %2230 = vmatprep.mubr.msk.f32.mxu1 %vm63_vm1, %v43_v3 }
 0x238   :  { %v772_v50 = vpop.permute.xlu1 %771  ;;  %v857_v27 = vadd.f32 %v845_v8, %v841_v21  ;;  %v2989_v21 = vld [vmem:[%s3694_s3 + $0x1] ss:$0 sm:$0xff] }
 0x239   :  { %2377 = vset.pattern.permute.xlu1 %v2548_v54  ;;  %v777_v4 = vmul.f32 %v2663_v17, %v772_v50 }
 0x23a   :  { %936 = vperm.xlu1 %2377, %v870_v49   ;;  %896 = vperm.xlu0 %2375, %v870_v49  }
 0x23b   :  { %v849_v22 = vadd.f32 %v797_v6, %v777_v4  ;;  %v44_v4 = vld [vmem:[%s3693_s0 + $0xa8] sm:$0xff] }
 0x23c   :  { %2231 = vmatmul.mubr.msk.f32.gmra.mrb[2].mxu1 %vm63_vm1, %v44_v4  ;;  %v3047_v4 = vld [vmem:[%s3695_s2] ss:$0 sm:$0xff] }
 0x23d   :  { %v812_v61 = vpop.permute.xlu1 %811 }
 0x23e   :  { %2378 = vset.pattern.permute.xlu1 %v2547_v53  ;;  %2376 = vset.pattern.permute.xlu0 %v2545_v9  ;;  %v817_v11 = vmul.f32 %v2673_v19, %v812_v61 }
 0x23f   :  { %956 = vperm.xlu1 %2378, %v870_v49   ;;  %916 = vperm.xlu0 %2376, %v870_v49  }
 0x242   :  { %v832_v7 = vpop.permute.xlu1 %831 }
 0x243   :  { %v837_v12 = vmul.f32 %v2678_v20, %v832_v7  ;;  %2380 = vset.pattern.permute.xlu1 %v2549_v55  ;;  %2379 = vset.pattern.permute.xlu0 %v2550_v56  ;;  %v808_v38 = vpop.permute.xlu0 %807  ;;  %v2977_v7 = vld [vmem:[%s3694_s3 + $0x2] ss:$0 sm:$0xff] }
 0x244   :  { %996 = vperm.xlu1 %2380, %v870_v49   ;;  %976 = vperm.xlu0 %2379, %v870_v49   ;;  %v816_v43 = vmul.f32 %v2673_v19, %v808_v38  ;;  %v281_v19 = vadd.f32 %v2691_v35, %v2852_v0 }
 0x245   :  { %v853_v23 = vadd.f32 %v837_v12, %v817_v11  ;;  %v2983_v11 = vld [vmem:[%s3694_s3 + $0x3] ss:$0 sm:$0xff] }
 0x246   :  { %v666_v24 = vpop.permute.xlu1 %665 }
 0x247   :  { %v861_v25 = vadd.f32 %v853_v23, %v849_v22  ;;  %676 = vst.msk [vmem:[#allocation2 + $0x10] sm:$0xff] %vm673_vm3, %v666_v24  ;;  %v2995_v23 = vld [vmem:[%s3694_s3 + $0x5] ss:$0 sm:$0xff] }
 0x248   :  { %2381 = vset.pattern.permute.xlu1 %v2552_v58  ;;  %2382 = vset.pattern.permute.xlu0 %v2551_v57 }
 0x249   :  { %v865_v29 = vadd.f32 %v861_v25, %v857_v27  ;;  %1016 = vperm.xlu1 %2381, %v870_v49   ;;  %1036 = vperm.xlu0 %2382, %v870_v49   ;;  %v3001_v27 = vld [vmem:[%s3694_s3] ss:$0 sm:$0xff] }
 0x24a   :  { %v688_v30 = vpop.permute.xlu1 %687 }
 0x24b   :  { %v869_v60 = vadd.f32 %v865_v29, %v286_v26  ;;  %v696_v45 = vmul.f32 %v2643_v13, %v688_v30  ;;  %v3007_v29 = vld [vmem:[%s3694_s3 + $0x6] ss:$0 sm:$0xff] }
 0x24d   :  { %v873_v31 = vmax.f32 %v869_v60, 0.0  ;;  %2383 = vset.pattern.permute.xlu0 %v2546_v10  ;;  %2384 = vset.pattern.permute.xlu1 %v2545_v9 }
 0x24f   :  { %v708_v33 = vpop.permute.xlu1 %707  ;;  %908 = vperm.xlu0 %2383, %v873_v31   ;;  %884 = vrot.lane.b32.xlu1 %v873_v31, %s2554_s28 }
 0x250   :  { %v716_v40 = vmul.f32 %v2648_v14, %v708_v33  ;;  %v2949_v14 = vpop.f32.mrb[14].mxu0 }
 0x253   :  { %2386 = vset.pattern.permute.xlu0 %v2547_v53  ;;  %928 = vperm.xlu1 %2384, %v873_v31  }
 0x254   :  { %v728_v32 = vpop.permute.xlu1 %727  ;;  %968 = vperm.xlu0 %2386, %v873_v31  }
 0x255   :  { %v736_v41 = vmul.f32 %v2653_v15, %v728_v32  ;;  %v3019_v32 = vld [vmem:[%s3694_s3 + $0x7] ss:$0 sm:$0xff] }
 0x257   :  { %2385 = vset.pattern.permute.xlu1 %v2548_v54 }
 0x258   :  { %2389 = vset.pattern.permute.xlu0 %v2552_v58  ;;  %948 = vperm.xlu1 %2385, %v873_v31  }
 0x259   :  { %v748_v34 = vpop.permute.xlu1 %747  ;;  %1028 = vperm.xlu0 %2389, %v873_v31  }
 0x25a   :  { %v756_v39 = vmul.f32 %v2658_v16, %v748_v34  ;;  %v840_v16 = vadd.f32 %v716_v40, %v696_v45 }
 0x25c   :  { %2387 = vset.pattern.permute.xlu1 %v2550_v56  ;;  %v844_v46 = vadd.f32 %v756_v39, %v736_v41  ;;  %v296_v41 = vadd.f32 %v2901_v52, %v2691_v35 }
 0x25d   :  { %988 = vperm.xlu1 %2387, %v873_v31   ;;  %2393 = vset.pattern.permute.xlu0 %v2548_v54 }
 0x25e   :  { %v768_v36 = vpop.permute.xlu1 %767  ;;  %v856_v15 = vadd.f32 %v844_v46, %v840_v16 }
 0x25f   :  { %v776_v47 = vmul.f32 %v2663_v17, %v768_v36  ;;  %v2954_v17 = vpop.f32.mrb[15].mxu0 }
 0x261   :  { %2388 = vset.pattern.permute.xlu1 %v2549_v55 }
 0x262   :  { %1008 = vperm.xlu1 %2388, %v873_v31  }
 0x263   :  { %v788_v37 = vpop.permute.xlu1 %787 }
 0x264   :  { %v796_v42 = vmul.f32 %v2668_v18, %v788_v37 }
 0x266   :  { %2390 = vset.pattern.permute.xlu1 %v2551_v57  ;;  %v848_v49 = vadd.f32 %v796_v42, %v776_v47 }
 0x267   :  { %1048 = vperm.xlu1 %2390, %v873_v31   ;;  %v3013_v31 = vld [vmem:[%s3694_s3 + $0x4] ss:$0 sm:$0xff] }
 0x268   :  { %v828_v44 = vpop.permute.xlu1 %827 }
 0x269   :  { %v836_v48 = vmul.f32 %v2678_v20, %v828_v44 }
 0x26b   :  { %v852_v50 = vadd.f32 %v836_v48, %v816_v43  ;;  %2391 = vset.pattern.permute.xlu1 %v2546_v10 }
 0x26d   :  { %v860_v18 = vadd.f32 %v852_v50, %v848_v49 }
 0x26f   :  { %v864_v51 = vadd.f32 %v860_v18, %v856_v15 }
 0x271   :  { %v868_v59 = vadd.f32 %v864_v51, %v281_v19 }
 0x273   :  { %v872_v13 = vmax.f32 %v868_v59, 0.0 }
 0x275   :  { %904 = vperm.xlu1 %2391, %v872_v13   ;;  %882 = vrot.lane.b32.xlu0 %v872_v13, %s2554_s28 }
 0x279   :  { %2392 = vset.pattern.permute.xlu1 %v2545_v9  ;;  %944 = vperm.xlu0 %2393, %v872_v13  }
 0x27a   :  { %924 = vperm.xlu1 %2392, %v872_v13  }
 0x27d   :  { %2396 = vset.pattern.permute.xlu0 %v2549_v55 }
 0x27e   :  { %2394 = vset.pattern.permute.xlu1 %v2547_v53  ;;  %1004 = vperm.xlu0 %2396, %v872_v13  }
 0x27f   :  { %964 = vperm.xlu1 %2394, %v872_v13  }
 0x282   :  { %2401 = vset.pattern.permute.xlu0 %v2548_v54 }
 0x283   :  { %2395 = vset.pattern.permute.xlu1 %v2550_v56 }
 0x284   :  { %984 = vperm.xlu1 %2395, %v872_v13  }
 0x288   :  { %2397 = vset.pattern.permute.xlu1 %v2552_v58 }
 0x289   :  { %1024 = vperm.xlu1 %2397, %v872_v13  }
 0x28a   :  { %v881_v20 = vpop.permute.xlu1 %880 }
 0x28b   :  { %892 = vst.msk [vmem:[#allocation2 + $0x8] sm:$0xff] %vm890_vm4, %v881_v20 }
 0x28d   :  { %2398 = vset.pattern.permute.xlu1 %v2551_v57 }
 0x28e   :  { %1044 = vperm.xlu1 %2398, %v872_v13  }
 0x292   :  { %2399 = vset.pattern.permute.xlu1 %v2546_v10 }
 0x297   :  { %v961_v61 = vpop.permute.xlu0 %960 }
 0x298   :  { %v972_v12 = vmul.f32 %v2983_v11, %v961_v61 }
 0x29b   :  { %v901_v0 = vpop.permute.xlu1 %900 }
 0x29c   :  { %v1021_v63 = vpop.permute.xlu0 %1020  ;;  %v912_v25 = vmul.f32 %v3001_v27, %v901_v0 }
 0x29d   :  { %v1032_v30 = vmul.f32 %v3007_v29, %v1021_v63 }
 0x2a0   :  { %v921_v62 = vpop.permute.xlu1 %920 }
 0x2a1   :  { %v932_v22 = vmul.f32 %v2989_v21, %v921_v62 }
 0x2a3   :  { %v1056_v36 = vadd.f32 %v932_v22, %v912_v25 }
 0x2a5   :  { %v941_v1 = vpop.permute.xlu1 %940 }
 0x2a6   :  { %v952_v8 = vmul.f32 %v2977_v7, %v941_v1 }
 0x2a8   :  { %v879_v2 = vpop.permute.xlu0 %878  ;;  %v1060_v60 = vadd.f32 %v972_v12, %v952_v8 }
 0x2a9   :  { %891 = vst.msk [vmem:[#allocation2] sm:$0xff] %vm890_vm4, %v879_v2 }
 0x2aa   :  { %v981_v5 = vpop.permute.xlu1 %980  ;;  %v1072_v39 = vadd.f32 %v1060_v60, %v1056_v36 }
 0x2ab   :  { %v992_v33 = vmul.f32 %v3013_v31, %v981_v5  ;;  %v291_v5 = vadd.f32 %v3047_v4, %v2903_v28 }
 0x2af   :  { %v1001_v6 = vpop.permute.xlu1 %1000 }
 0x2b0   :  { %v1012_v24 = vmul.f32 %v2995_v23, %v1001_v6 }
 0x2b2   :  { %v1064_v37 = vadd.f32 %v1012_v24, %v992_v33 }
 0x2b4   :  { %v1041_v26 = vpop.permute.xlu1 %1040 }
 0x2b5   :  { %v1052_v34 = vmul.f32 %v3019_v32, %v1041_v26 }
 0x2b7   :  { %v1068_v38 = vadd.f32 %v1052_v34, %v1032_v30  ;;  %v3064_v30 = vpop.f32.mrb[16].mxu0 }
 0x2b8   :  { %v3068_v60 = vpop.f32.mrb[17].mxu0 }
 0x2b9   :  { %v1076_v40 = vadd.f32 %v1068_v38, %v1064_v37  ;;  %v937_v42 = vpop.permute.xlu1 %936  ;;  %v897_v43 = vpop.permute.xlu0 %896  ;;  %v45_v37 = vld [vmem:[%s3693_s0 + $0xb0] sm:$0xff] }
 0x2ba   :  { %v951_v35 = vmul.f32 %v2977_v7, %v937_v42  ;;  %v911_v52 = vmul.f32 %v3001_v27, %v897_v43  ;;  %2233 = vmatprep.mubr.msk.f32.mxu1 %vm63_vm1, %v45_v37  ;;  %v46_v43 = vld [vmem:[%s3693_s0 + $0xb8] sm:$0xff] }
 0x2bb   :  { %v1080_v44 = vadd.f32 %v1076_v40, %v1072_v39  ;;  %2234 = vmatmul.mubr.msk.f32.gmra.mrb[4].mxu1 %vm63_vm1, %v46_v43 }
 0x2bd   :  { %v1084_v45 = vadd.f32 %v1080_v44, %v296_v41 }
 0x2be   :  { %v957_v46 = vpop.permute.xlu1 %956  ;;  %v917_v47 = vpop.permute.xlu0 %916 }
 0x2bf   :  { %v3024_v48 = vmax.f32 %v1084_v45, 0.0  ;;  %v971_v50 = vmul.f32 %v2983_v11, %v957_v46  ;;  %v931_v15 = vmul.f32 %v2989_v21, %v917_v47 }
 0x2c1   :  { %1157 = vperm.xlu0 %2401, %v3024_v48   ;;  %1117 = vperm.xlu1 %2399, %v3024_v48   ;;  %v1059_v13 = vadd.f32 %v971_v50, %v951_v35  ;;  %v1055_v20 = vadd.f32 %v931_v15, %v911_v52 }
 0x2c3   :  { %v997_v16 = vpop.permute.xlu1 %996  ;;  %v977_v49 = vpop.permute.xlu0 %976  ;;  %v1071_v2 = vadd.f32 %v1059_v13, %v1055_v20 }
 0x2c4   :  { %v1011_v18 = vmul.f32 %v2995_v23, %v997_v16  ;;  %v991_v19 = vmul.f32 %v3013_v31, %v977_v49 }
 0x2c5   :  { %2404 = vset.pattern.permute.xlu0 %v2549_v55  ;;  %2400 = vset.pattern.permute.xlu1 %v2545_v9 }
 0x2c6   :  { %1217 = vperm.xlu0 %2404, %v3024_v48   ;;  %1137 = vperm.xlu1 %2400, %v3024_v48   ;;  %v1063_v62 = vadd.f32 %v1011_v18, %v991_v19  ;;  %v306_v18 = vadd.f32 %v3047_v4, %v2949_v14 }
 0x2c8   :  { %v1017_v51 = vpop.permute.xlu1 %1016  ;;  %v1037_v59 = vpop.permute.xlu0 %1036 }
 0x2c9   :  { %v1031_v0 = vmul.f32 %v3007_v29, %v1017_v51  ;;  %v1051_v61 = vmul.f32 %v3019_v32, %v1037_v59 }
 0x2ca   :  { %2402 = vset.pattern.permute.xlu1 %v2547_v53  ;;  %2408 = vset.pattern.permute.xlu0 %v2545_v9 }
 0x2cb   :  { %v1067_v63 = vadd.f32 %v1051_v61, %v1031_v0  ;;  %1177 = vperm.xlu1 %2402, %v3024_v48  }
 0x2cc   :  { %v885_v1 = vpop.permute.xlu1 %884 }
 0x2cd   :  { %v1075_v3 = vadd.f32 %v1067_v63, %v1063_v62  ;;  %894 = vst.msk [vmem:[#allocation2 + $0x18] sm:$0xff] %vm890_vm4, %v885_v1 }
 0x2ce   :  { %v909_v24 = vpop.permute.xlu0 %908 }
 0x2cf   :  { %v1079_v6 = vadd.f32 %v1075_v3, %v1071_v2  ;;  %2403 = vset.pattern.permute.xlu1 %v2550_v56  ;;  %v914_v41 = vmul.f32 %v3001_v27, %v909_v24 }
 0x2d0   :  { %1197 = vperm.xlu1 %2403, %v3024_v48  }
 0x2d1   :  { %v1083_v8 = vadd.f32 %v1079_v6, %v291_v5 }
 0x2d2   :  { %v929_v12 = vpop.permute.xlu1 %928 }
 0x2d3   :  { %v3053_v22 = vmax.f32 %v1083_v8, 0.0  ;;  %v969_v26 = vpop.permute.xlu0 %968  ;;  %v934_v38 = vmul.f32 %v2989_v21, %v929_v12 }
 0x2d4   :  { %2405 = vset.pattern.permute.xlu1 %v2552_v58  ;;  %v974_v39 = vmul.f32 %v2983_v11, %v969_v26 }
 0x2d5   :  { %1237 = vperm.xlu1 %2405, %v3024_v48   ;;  %1133 = vperm.xlu0 %2408, %v3053_v22   ;;  %v1058_v49 = vadd.f32 %v934_v38, %v914_v41 }
 0x2d7   :  { %v949_v25 = vpop.permute.xlu1 %948 }
 0x2d8   :  { %v954_v34 = vmul.f32 %v2977_v7, %v949_v25  ;;  %v1029_v36 = vpop.permute.xlu0 %1028 }
 0x2d9   :  { %2406 = vset.pattern.permute.xlu1 %v2551_v57  ;;  %2411 = vset.pattern.permute.xlu0 %v2550_v56  ;;  %v1034_v45 = vmul.f32 %v3007_v29, %v1029_v36 }
 0x2da   :  { %1257 = vperm.xlu1 %2406, %v3024_v48   ;;  %1193 = vperm.xlu0 %2411, %v3053_v22   ;;  %v1062_v44 = vadd.f32 %v974_v39, %v954_v34  ;;  %v301_v39 = vadd.f32 %v3047_v4, %v2954_v17 }
 0x2dc   :  { %v989_v28 = vpop.permute.xlu1 %988  ;;  %v1074_v35 = vadd.f32 %v1062_v44, %v1058_v49 }
 0x2dd   :  { %v994_v46 = vmul.f32 %v3013_v31, %v989_v28 }
 0x2de   :  { %2407 = vset.pattern.permute.xlu1 %v2546_v10  ;;  %2414 = vset.pattern.permute.xlu0 %v2551_v57 }
 0x2df   :  { %1253 = vperm.xlu0 %2414, %v3053_v22   ;;  %1113 = vperm.xlu1 %2407, %v3053_v22  }
 0x2e1   :  { %v1009_v33 = vpop.permute.xlu1 %1008 }
 0x2e2   :  { %v1014_v40 = vmul.f32 %v2995_v23, %v1009_v33 }
 0x2e3   :  { %2409 = vset.pattern.permute.xlu1 %v2548_v54  ;;  %2416 = vset.pattern.permute.xlu0 %v2545_v9  ;;  %v3125_v38 = vpop.f32.mrb[0].mxu1 }
 0x2e4   :  { %1153 = vperm.xlu1 %2409, %v3053_v22   ;;  %v1066_v50 = vadd.f32 %v1014_v40, %v994_v46  ;;  %v47_v46 = vld [vmem:[%s3693_s0 + $0xc0] sm:$0xff] }
 0x2e5   :  { %2236 = vmatprep.mubr.msk.f32.mxu1 %vm63_vm1, %v47_v46 }
 0x2e6   :  { %v1049_v42 = vpop.permute.xlu1 %1048 }
 0x2e7   :  { %v1054_v47 = vmul.f32 %v3019_v32, %v1049_v42  ;;  %v883_v16 = vpop.permute.xlu0 %882  ;;  %v3129_v42 = vpop.f32.mrb[1].mxu1 }
 0x2e8   :  { %893 = vst.msk [vmem:[#allocation2 + $0x10] sm:$0xff] %vm890_vm4, %v883_v16  ;;  %2410 = vset.pattern.permute.xlu1 %v2547_v53 }
 0x2e9   :  { %v1070_v15 = vadd.f32 %v1054_v47, %v1034_v45  ;;  %1173 = vperm.xlu1 %2410, %v3053_v22   ;;  %v48_v47 = vld [vmem:[%s3693_s0 + $0xc8] sm:$0xff] }
 0x2ea   :  { %2237 = vmatmul.mubr.msk.f32.gmra.mrb[6].mxu1 %vm63_vm1, %v48_v47 }
 0x2eb   :  { %v1078_v52 = vadd.f32 %v1070_v15, %v1066_v50 }
 0x2ed   :  { %v1082_v19 = vadd.f32 %v1078_v52, %v1074_v35  ;;  %2412 = vset.pattern.permute.xlu1 %v2549_v55 }
 0x2ee   :  { %1213 = vperm.xlu1 %2412, %v3053_v22  }
 0x2ef   :  { %v1086_v51 = vadd.f32 %v1082_v19, %v306_v18 }
 0x2f1   :  { %v3096_v59 = vmax.f32 %v1086_v51, 0.0 }
 0x2f2   :  { %2413 = vset.pattern.permute.xlu1 %v2552_v58 }
 0x2f3   :  { %1233 = vperm.xlu1 %2413, %v3053_v22   ;;  %1145 = vperm.xlu0 %2416, %v3096_v59  }
 0x2f4   :  { %v905_v13 = vpop.permute.xlu1 %904 }
 0x2f5   :  { %v913_v6 = vmul.f32 %v3001_v27, %v905_v13 }
 0x2f7   :  { %2415 = vset.pattern.permute.xlu1 %v2546_v10  ;;  %2419 = vset.pattern.permute.xlu0 %v2550_v56 }
 0x2f8   :  { %1205 = vperm.xlu0 %2419, %v3096_v59   ;;  %1125 = vperm.xlu1 %2415, %v3096_v59   ;;  %v945_v61 = vpop.permute.xlu0 %944 }
 0x2f9   :  { %v925_v14 = vpop.permute.xlu1 %924  ;;  %v953_v2 = vmul.f32 %v2977_v7, %v945_v61 }
 0x2fa   :  { %v933_v3 = vmul.f32 %v2989_v21, %v925_v14 }
 0x2fc   :  { %2422 = vset.pattern.permute.xlu0 %v2551_v57  ;;  %2417 = vset.pattern.permute.xlu1 %v2548_v54  ;;  %v1057_v26 = vadd.f32 %v933_v3, %v913_v6 }
 0x2fd   :  { %1265 = vperm.xlu0 %2422, %v3096_v59   ;;  %1165 = vperm.xlu1 %2417, %v3096_v59   ;;  %v1005_v1 = vpop.permute.xlu0 %1004 }
 0x2fe   :  { %v965_v20 = vpop.permute.xlu1 %964  ;;  %v1013_v12 = vmul.f32 %v2995_v23, %v1005_v1 }
 0x2ff   :  { %v973_v63 = vmul.f32 %v2983_v11, %v965_v20 }
 0x301   :  { %2418 = vset.pattern.permute.xlu1 %v2547_v53  ;;  %2423 = vset.pattern.permute.xlu0 %v2546_v10  ;;  %v1061_v24 = vadd.f32 %v973_v63, %v953_v2 }
 0x302   :  { %1185 = vperm.xlu1 %2418, %v3096_v59  }
 0x303   :  { %v985_v0 = vpop.permute.xlu1 %984  ;;  %v1073_v36 = vadd.f32 %v1061_v24, %v1057_v26 }
 0x304   :  { %v993_v5 = vmul.f32 %v3013_v31, %v985_v0 }
 0x306   :  { %2420 = vset.pattern.permute.xlu1 %v2549_v55  ;;  %v1065_v33 = vadd.f32 %v1013_v12, %v993_v5  ;;  %v316_v5 = vadd.f32 %v3047_v4, %v3064_v30 }
 0x307   :  { %1225 = vperm.xlu1 %2420, %v3096_v59  }
 0x308   :  { %v1025_v62 = vpop.permute.xlu1 %1024 }
 0x309   :  { %v1033_v25 = vmul.f32 %v3007_v29, %v1025_v62 }
 0x30b   :  { %2421 = vset.pattern.permute.xlu1 %v2552_v58 }
 0x30c   :  { %1245 = vperm.xlu1 %2421, %v3096_v59  }
 0x30d   :  { %v1045_v8 = vpop.permute.xlu1 %1044 }
 0x30e   :  { %v1053_v28 = vmul.f32 %v3019_v32, %v1045_v8 }
 0x310   :  { %v1069_v34 = vadd.f32 %v1053_v28, %v1033_v25  ;;  %2424 = vset.pattern.permute.xlu1 %v2545_v9 }
 0x312   :  { %v1077_v37 = vadd.f32 %v1069_v34, %v1065_v33 }
 0x314   :  { %v1081_v40 = vadd.f32 %v1077_v37, %v1073_v36 }
 0x316   :  { %v1085_v41 = vadd.f32 %v1081_v40, %v301_v39 }
 0x318   :  { %v3131_v43 = vmax.f32 %v1085_v41, 0.0 }
 0x31a   :  { %1141 = vperm.xlu1 %2424, %v3131_v43   ;;  %1121 = vperm.xlu0 %2423, %v3131_v43  }
 0x31e   :  { %2425 = vset.pattern.permute.xlu1 %v2548_v54  ;;  %2426 = vset.pattern.permute.xlu0 %v2547_v53 }
 0x31f   :  { %1161 = vperm.xlu1 %2425, %v3131_v43   ;;  %1181 = vperm.xlu0 %2426, %v3131_v43  }
 0x323   :  { %2427 = vset.pattern.permute.xlu1 %v2550_v56  ;;  %2429 = vset.pattern.permute.xlu0 %v2552_v58 }
 0x324   :  { %1201 = vperm.xlu1 %2427, %v3131_v43   ;;  %1241 = vperm.xlu0 %2429, %v3131_v43  }
 0x328   :  { %2428 = vset.pattern.permute.xlu1 %v2549_v55  ;;  %2431 = vset.pattern.permute.xlu0 %v2546_v10 }
 0x329   :  { %1221 = vperm.xlu1 %2428, %v3131_v43  }
 0x32d   :  { %2430 = vset.pattern.permute.xlu1 %v2551_v57 }
 0x32e   :  { %1261 = vperm.xlu1 %2430, %v3131_v43  }
 0x332   :  { %2432 = vset.pattern.permute.xlu1 %v2545_v9 }
 0x340   :  { %v1118_v17 = vpop.permute.xlu1 %1117  ;;  %v1158_v49 = vpop.permute.xlu0 %1157 }
 0x341   :  { %v1169_v52 = vmul.f32 %v2977_v7, %v1158_v49  ;;  %v1129_v51 = vmul.f32 %v3001_v27, %v1118_v17 }
 0x345   :  { %v1138_v44 = vpop.permute.xlu1 %1137  ;;  %v1218_v35 = vpop.permute.xlu0 %1217 }
 0x346   :  { %v1149_v18 = vmul.f32 %v2989_v21, %v1138_v44  ;;  %v1229_v14 = vmul.f32 %v2995_v23, %v1218_v35 }
 0x348   :  { %v1273_v62 = vadd.f32 %v1149_v18, %v1129_v51  ;;  %v311_v18 = vadd.f32 %v3047_v4, %v3068_v60 }
 0x34a   :  { %v1178_v45 = vpop.permute.xlu1 %1177 }
 0x34b   :  { %v1189_v15 = vmul.f32 %v2983_v11, %v1178_v45 }
 0x34d   :  { %v1277_v20 = vadd.f32 %v1189_v15, %v1169_v52 }
 0x34f   :  { %v1198_v16 = vpop.permute.xlu1 %1197  ;;  %v1289_v2 = vadd.f32 %v1277_v20, %v1273_v62 }
 0x350   :  { %v1209_v19 = vmul.f32 %v3013_v31, %v1198_v16 }
 0x352   :  { %v1281_v63 = vadd.f32 %v1229_v14, %v1209_v19 }
 0x354   :  { %v1238_v50 = vpop.permute.xlu1 %1237  ;;  %v1134_v25 = vpop.permute.xlu0 %1133 }
 0x355   :  { %v1249_v0 = vmul.f32 %v3007_v29, %v1238_v50  ;;  %v1148_v41 = vmul.f32 %v2989_v21, %v1134_v25 }
 0x359   :  { %v1258_v13 = vpop.permute.xlu1 %1257  ;;  %v1194_v33 = vpop.permute.xlu0 %1193 }
 0x35a   :  { %v1269_v61 = vmul.f32 %v3019_v32, %v1258_v13  ;;  %v1208_v44 = vmul.f32 %v3013_v31, %v1194_v33 }
 0x35c   :  { %v1285_v1 = vadd.f32 %v1269_v61, %v1249_v0  ;;  %v3199_v0 = vpop.f32.mrb[2].mxu1 }
 0x35e   :  { %v1293_v3 = vadd.f32 %v1285_v1, %v1281_v63  ;;  %v1114_v6 = vpop.permute.xlu1 %1113  ;;  %v1254_v36 = vpop.permute.xlu0 %1253  ;;  %v49_v63 = vld [vmem:[%s3693_s0 + $0xd0] sm:$0xff]  ;;  %v50_v1 = vld [vmem:[%s3693_s0 + $0xd8] sm:$0xff] }
 0x35f   :  { %v1128_v37 = vmul.f32 %v3001_v27, %v1114_v6  ;;  %v1268_v45 = vmul.f32 %v3019_v32, %v1254_v36  ;;  %2239 = vmatprep.mubr.msk.f32.mxu1 %vm63_vm1, %v49_v63 }
 0x360   :  { %v1297_v8 = vadd.f32 %v1293_v3, %v1289_v2  ;;  %2240 = vmatmul.mubr.msk.f32.gmra.mrb[8].mxu1 %vm63_vm1, %v50_v1 }
 0x361   :  { %v1272_v16 = vadd.f32 %v1148_v41, %v1128_v37 }
 0x362   :  { %v1301_v12 = vadd.f32 %v1297_v8, %v316_v5  ;;  %v3217_v5 = vpop.f32.mrb[3].mxu1 }
 0x363   :  { %v1154_v24 = vpop.permute.xlu1 %1153 }
 0x364   :  { %v3167_v28 = vmax.f32 %v1301_v12, 0.0  ;;  %v1168_v39 = vmul.f32 %v2977_v7, %v1154_v24 }
 0x366   :  { %1354 = vperm.xlu1 %2432, %v3167_v28   ;;  %1334 = vperm.xlu0 %2431, %v3167_v28  }
 0x368   :  { %v1174_v26 = vpop.permute.xlu1 %1173 }
 0x369   :  { %v1188_v34 = vmul.f32 %v2983_v11, %v1174_v26 }
 0x36a   :  { %2433 = vset.pattern.permute.xlu1 %v2548_v54  ;;  %2434 = vset.pattern.permute.xlu0 %v2547_v53 }
 0x36b   :  { %1374 = vperm.xlu1 %2433, %v3167_v28   ;;  %1394 = vperm.xlu0 %2434, %v3167_v28   ;;  %v1276_v46 = vadd.f32 %v1188_v34, %v1168_v39 }
 0x36d   :  { %v1214_v30 = vpop.permute.xlu1 %1213  ;;  %v1288_v15 = vadd.f32 %v1276_v46, %v1272_v16 }
 0x36e   :  { %v1228_v40 = vmul.f32 %v2995_v23, %v1214_v30 }
 0x36f   :  { %2435 = vset.pattern.permute.xlu1 %v2550_v56  ;;  %2437 = vset.pattern.permute.xlu0 %v2552_v58 }
 0x370   :  { %1414 = vperm.xlu1 %2435, %v3167_v28   ;;  %1454 = vperm.xlu0 %2437, %v3167_v28   ;;  %v1280_v49 = vadd.f32 %v1228_v40, %v1208_v44 }
 0x372   :  { %v1234_v17 = vpop.permute.xlu1 %1233  ;;  %v1146_v20 = vpop.permute.xlu0 %1145 }
 0x373   :  { %v1248_v47 = vmul.f32 %v3007_v29, %v1234_v17  ;;  %v1151_v24 = vmul.f32 %v2989_v21, %v1146_v20  ;;  %v326_v17 = vadd.f32 %v3047_v4, %v3125_v38 }
 0x374   :  { %2436 = vset.pattern.permute.xlu1 %v2549_v55  ;;  %2441 = vset.pattern.permute.xlu0 %v2548_v54 }
 0x375   :  { %v1284_v50 = vadd.f32 %v1268_v45, %v1248_v47  ;;  %1434 = vperm.xlu1 %2436, %v3167_v28  }
 0x377   :  { %v1292_v35 = vadd.f32 %v1284_v50, %v1280_v49  ;;  %v1126_v52 = vpop.permute.xlu1 %1125  ;;  %v1206_v60 = vpop.permute.xlu0 %1205 }
 0x378   :  { %v1131_v6 = vmul.f32 %v3001_v27, %v1126_v52  ;;  %v1211_v26 = vmul.f32 %v3013_v31, %v1206_v60 }
 0x379   :  { %v1296_v19 = vadd.f32 %v1292_v35, %v1288_v15  ;;  %2438 = vset.pattern.permute.xlu1 %v2551_v57 }
 0x37a   :  { %1474 = vperm.xlu1 %2438, %v3167_v28   ;;  %v1275_v36 = vadd.f32 %v1151_v24, %v1131_v6 }
 0x37b   :  { %v1300_v51 = vadd.f32 %v1296_v19, %v311_v18 }
 0x37c   :  { %v1166_v13 = vpop.permute.xlu1 %1165  ;;  %v1266_v3 = vpop.permute.xlu0 %1265 }
 0x37d   :  { %v3194_v14 = vmax.f32 %v1300_v51, 0.0  ;;  %v1171_v8 = vmul.f32 %v2977_v7, %v1166_v13  ;;  %v1271_v33 = vmul.f32 %v3019_v32, %v1266_v3 }
 0x37e   :  { %2439 = vset.pattern.permute.xlu1 %v2546_v10 }
 0x37f   :  { %1370 = vperm.xlu0 %2441, %v3194_v14   ;;  %1330 = vperm.xlu1 %2439, %v3194_v14  }
 0x381   :  { %v1186_v61 = vpop.permute.xlu1 %1185 }
 0x382   :  { %v1191_v2 = vmul.f32 %v2983_v11, %v1186_v61 }
 0x383   :  { %2444 = vset.pattern.permute.xlu0 %v2549_v55  ;;  %2440 = vset.pattern.permute.xlu1 %v2545_v9 }
 0x384   :  { %1430 = vperm.xlu0 %2444, %v3194_v14   ;;  %1350 = vperm.xlu1 %2440, %v3194_v14   ;;  %v1279_v30 = vadd.f32 %v1191_v2, %v1171_v8 }
 0x386   :  { %v1226_v62 = vpop.permute.xlu1 %1225  ;;  %v1291_v40 = vadd.f32 %v1279_v30, %v1275_v36 }
 0x387   :  { %v1231_v12 = vmul.f32 %v2995_v23, %v1226_v62 }
 0x388   :  { %2442 = vset.pattern.permute.xlu1 %v2547_v53  ;;  %2449 = vset.pattern.permute.xlu0 %v2548_v54 }
 0x389   :  { %1390 = vperm.xlu1 %2442, %v3194_v14   ;;  %v1283_v37 = vadd.f32 %v1231_v12, %v1211_v26  ;;  %v321_v12 = vadd.f32 %v3047_v4, %v3129_v42 }
 0x38b   :  { %v1246_v25 = vpop.permute.xlu1 %1245 }
 0x38c   :  { %v1251_v34 = vmul.f32 %v3007_v29, %v1246_v25 }
 0x38d   :  { %2443 = vset.pattern.permute.xlu1 %v2550_v56 }
 0x38e   :  { %v1287_v39 = vadd.f32 %v1271_v33, %v1251_v34  ;;  %1410 = vperm.xlu1 %2443, %v3194_v14   ;;  %v3266_v33 = vpop.f32.mrb[4].mxu1 }
 0x38f   :  { %v3269_v30 = vpop.f32.mrb[5].mxu1 }
 0x390   :  { %v1295_v41 = vadd.f32 %v1287_v39, %v1283_v37  ;;  %v51_v39 = vld [vmem:[%s3693_s0 + $0xe0] sm:$0xff] }
 0x391   :  { %2242 = vmatprep.mubr.msk.f32.mxu1 %vm63_vm1, %v51_v39 }
 0x392   :  { %v1299_v44 = vadd.f32 %v1295_v41, %v1291_v40  ;;  %2445 = vset.pattern.permute.xlu1 %v2552_v58  ;;  %v52_v40 = vld [vmem:[%s3693_s0 + $0xe8] sm:$0xff] }
 0x393   :  { %1450 = vperm.xlu1 %2445, %v3194_v14   ;;  %2243 = vmatmul.mubr.msk.f32.gmra.mrb[10].mxu1 %vm63_vm1, %v52_v40 }
 0x394   :  { %v1303_v45 = vadd.f32 %v1299_v44, %v326_v17 }
 0x396   :  { %v3232_v46 = vmax.f32 %v1303_v45, 0.0 }
 0x397   :  { %2446 = vset.pattern.permute.xlu1 %v2551_v57 }
 0x398   :  { %1470 = vperm.xlu1 %2446, %v3194_v14   ;;  %1382 = vperm.xlu0 %2449, %v3232_v46  }
 0x399   :  { %v1142_v47 = vpop.permute.xlu1 %1141  ;;  %v1122_v16 = vpop.permute.xlu0 %1121 }
 0x39a   :  { %v1150_v19 = vmul.f32 %v2989_v21, %v1142_v47  ;;  %v1130_v51 = vmul.f32 %v3001_v27, %v1122_v16 }
 0x39c   :  { %2447 = vset.pattern.permute.xlu1 %v2546_v10  ;;  %2452 = vset.pattern.permute.xlu0 %v2549_v55  ;;  %v1274_v1 = vadd.f32 %v1150_v19, %v1130_v51 }
 0x39d   :  { %1442 = vperm.xlu0 %2452, %v3232_v46   ;;  %1342 = vperm.xlu1 %2447, %v3232_v46  }
 0x39e   :  { %v1162_v38 = vpop.permute.xlu1 %1161  ;;  %v1182_v50 = vpop.permute.xlu0 %1181 }
 0x39f   :  { %v1170_v35 = vmul.f32 %v2977_v7, %v1162_v38  ;;  %v1190_v52 = vmul.f32 %v2983_v11, %v1182_v50 }
 0x3a1   :  { %2448 = vset.pattern.permute.xlu1 %v2545_v9  ;;  %2456 = vset.pattern.permute.xlu0 %v2545_v9  ;;  %v1278_v61 = vadd.f32 %v1190_v52, %v1170_v35 }
 0x3a2   :  { %1362 = vperm.xlu1 %2448, %v3232_v46  }
 0x3a3   :  { %v1202_v49 = vpop.permute.xlu1 %1201  ;;  %v1242_v18 = vpop.permute.xlu0 %1241  ;;  %v1290_v6 = vadd.f32 %v1278_v61, %v1274_v1 }
 0x3a4   :  { %v1210_v60 = vmul.f32 %v3013_v31, %v1202_v49  ;;  %v1250_v62 = vmul.f32 %v3007_v29, %v1242_v18 }
 0x3a6   :  { %2450 = vset.pattern.permute.xlu1 %v2547_v53 }
 0x3a7   :  { %1402 = vperm.xlu1 %2450, %v3232_v46  }
 0x3a8   :  { %v1222_v15 = vpop.permute.xlu1 %1221 }
 0x3a9   :  { %v1230_v13 = vmul.f32 %v2995_v23, %v1222_v15 }
 0x3ab   :  { %2451 = vset.pattern.permute.xlu1 %v2550_v56  ;;  %v1282_v2 = vadd.f32 %v1230_v13, %v1210_v60 }
 0x3ac   :  { %1422 = vperm.xlu1 %2451, %v3232_v46  }
 0x3ad   :  { %v1262_v20 = vpop.permute.xlu1 %1261 }
 0x3ae   :  { %v1270_v63 = vmul.f32 %v3019_v32, %v1262_v20 }
 0x3b0   :  { %v1286_v3 = vadd.f32 %v1270_v63, %v1250_v62  ;;  %2453 = vset.pattern.permute.xlu1 %v2552_v58  ;;  %v336_v62 = vadd.f32 %v3047_v4, %v3199_v0 }
 0x3b1   :  { %1462 = vperm.xlu1 %2453, %v3232_v46  }
 0x3b2   :  { %v1294_v8 = vadd.f32 %v1286_v3, %v1282_v2 }
 0x3b4   :  { %v1298_v24 = vadd.f32 %v1294_v8, %v1290_v6 }
 0x3b5   :  { %2454 = vset.pattern.permute.xlu1 %v2551_v57 }
 0x3b6   :  { %v1302_v25 = vadd.f32 %v1298_v24, %v321_v12  ;;  %1482 = vperm.xlu1 %2454, %v3232_v46  }
 0x3b8   :  { %v3262_v26 = vmax.f32 %v1302_v25, 0.0 }
 0x3ba   :  { %2455 = vset.pattern.permute.xlu1 %v2546_v10  ;;  %1358 = vperm.xlu0 %2456, %v3262_v26  }
 0x3bb   :  { %1338 = vperm.xlu1 %2455, %v3262_v26  }
 0x3be   :  { %2459 = vset.pattern.permute.xlu0 %v2550_v56 }
 0x3bf   :  { %1418 = vperm.xlu0 %2459, %v3262_v26   ;;  %2457 = vset.pattern.permute.xlu1 %v2548_v54 }
 0x3c0   :  { %1378 = vperm.xlu1 %2457, %v3262_v26  }
 0x3c3   :  { %2462 = vset.pattern.permute.xlu0 %v2551_v57 }
 0x3c4   :  { %1478 = vperm.xlu0 %2462, %v3262_v26   ;;  %2458 = vset.pattern.permute.xlu1 %v2547_v53 }
 0x3c5   :  { %1398 = vperm.xlu1 %2458, %v3262_v26  }
 0x3c8   :  { %2464 = vset.pattern.permute.xlu0 %v2545_v9 }
 0x3c9   :  { %2460 = vset.pattern.permute.xlu1 %v2549_v55 }
 0x3ca   :  { %1438 = vperm.xlu1 %2460, %v3262_v26  }
 0x3ce   :  { %2461 = vset.pattern.permute.xlu1 %v2552_v58 }
 0x3cf   :  { %1458 = vperm.xlu1 %2461, %v3262_v26  }
 0x3d3   :  { %2463 = vset.pattern.permute.xlu1 %v2546_v10 }
 0x3e5   :  { %v1355_v42 = vpop.permute.xlu1 %1354  ;;  %v1335_v36 = vpop.permute.xlu0 %1334 }
 0x3e6   :  { %v1366_v38 = vmul.f32 %v2989_v21, %v1355_v42  ;;  %v1346_v16 = vmul.f32 %v3001_v27, %v1335_v36 }
 0x3e8   :  { %v1490_v19 = vadd.f32 %v1366_v38, %v1346_v16 }
 0x3ea   :  { %v1375_v34 = vpop.permute.xlu1 %1374  ;;  %v1395_v41 = vpop.permute.xlu0 %1394 }
 0x3eb   :  { %v1386_v44 = vmul.f32 %v2977_v7, %v1375_v34  ;;  %v1406_v45 = vmul.f32 %v2983_v11, %v1395_v41 }
 0x3ed   :  { %v1494_v15 = vadd.f32 %v1406_v45, %v1386_v44 }
 0x3ef   :  { %v1415_v37 = vpop.permute.xlu1 %1414  ;;  %v1455_v47 = vpop.permute.xlu0 %1454  ;;  %v1506_v20 = vadd.f32 %v1494_v15, %v1490_v19  ;;  %v331_v15 = vadd.f32 %v3047_v4, %v3217_v5 }
 0x3f0   :  { %v1426_v35 = vmul.f32 %v3013_v31, %v1415_v37  ;;  %v1466_v52 = vmul.f32 %v3007_v29, %v1455_v47 }
 0x3f4   :  { %v1435_v17 = vpop.permute.xlu1 %1434 }
 0x3f5   :  { %v1446_v49 = vmul.f32 %v2995_v23, %v1435_v17 }
 0x3f7   :  { %v1498_v51 = vadd.f32 %v1446_v49, %v1426_v35 }
 0x3f9   :  { %v1475_v50 = vpop.permute.xlu1 %1474 }
 0x3fa   :  { %v1486_v18 = vmul.f32 %v3019_v32, %v1475_v50 }
 0x3fc   :  { %v1502_v13 = vadd.f32 %v1486_v18, %v1466_v52  ;;  %v3331_v52 = vpop.f32.mrb[6].mxu1 }
 0x3fe   :  { %v1510_v61 = vadd.f32 %v1502_v13, %v1498_v51  ;;  %v1331_v60 = vpop.permute.xlu1 %1330  ;;  %v1371_v0 = vpop.permute.xlu0 %1370 }
 0x3ff   :  { %v1385_v42 = vmul.f32 %v2977_v7, %v1371_v0  ;;  %v1345_v37 = vmul.f32 %v3001_v27, %v1331_v60 }
 0x400   :  { %v1514_v63 = vadd.f32 %v1510_v61, %v1506_v20  ;;  %v3345_v61 = vpop.f32.mrb[7].mxu1 }
 0x402   :  { %v1518_v1 = vadd.f32 %v1514_v63, %v336_v62 }
 0x403   :  { %v1351_v2 = vpop.permute.xlu1 %1350  ;;  %v1431_v25 = vpop.permute.xlu0 %1430 }
 0x404   :  { %v3303_v3 = vmax.f32 %v1518_v1, 0.0  ;;  %v1365_v34 = vmul.f32 %v2989_v21, %v1351_v2  ;;  %v1445_v40 = vmul.f32 %v2995_v23, %v1431_v25 }
 0x406   :  { %1571 = vperm.xlu0 %2464, %v3303_v3   ;;  %1551 = vperm.xlu1 %2463, %v3303_v3   ;;  %v1489_v45 = vadd.f32 %v1365_v34, %v1345_v37 }
 0x408   :  { %v1391_v6 = vpop.permute.xlu1 %1390 }
 0x409   :  { %v1405_v24 = vmul.f32 %v2983_v11, %v1391_v6 }
 0x40a   :  { %2467 = vset.pattern.permute.xlu0 %v2550_v56  ;;  %2465 = vset.pattern.permute.xlu1 %v2548_v54 }
 0x40b   :  { %1631 = vperm.xlu0 %2467, %v3303_v3   ;;  %1591 = vperm.xlu1 %2465, %v3303_v3   ;;  %v1493_v41 = vadd.f32 %v1405_v24, %v1385_v42 }
 0x40d   :  { %v1411_v8 = vpop.permute.xlu1 %1410  ;;  %v1505_v16 = vadd.f32 %v1493_v41, %v1489_v45  ;;  %v346_v41 = vadd.f32 %v3047_v4, %v3266_v33  ;;  %v54_v33 = vld [vmem:[%s3693_s0 + $0xf8] sm:$0xff] }
 0x40e   :  { %v1425_v36 = vmul.f32 %v3013_v31, %v1411_v8 }
 0x40f   :  { %2470 = vset.pattern.permute.xlu0 %v2551_v57  ;;  %2466 = vset.pattern.permute.xlu1 %v2547_v53 }
 0x410   :  { %1691 = vperm.xlu0 %2470, %v3303_v3   ;;  %1611 = vperm.xlu1 %2466, %v3303_v3   ;;  %v1497_v47 = vadd.f32 %v1445_v40, %v1425_v36 }
 0x412   :  { %v1451_v12 = vpop.permute.xlu1 %1450 }
 0x413   :  { %v1465_v17 = vmul.f32 %v3007_v29, %v1451_v12 }
 0x414   :  { %2468 = vset.pattern.permute.xlu1 %v2549_v55  ;;  %2471 = vset.pattern.permute.xlu0 %v2546_v10 }
 0x415   :  { %1651 = vperm.xlu1 %2468, %v3303_v3  }
 0x417   :  { %v1471_v39 = vpop.permute.xlu1 %1470  ;;  %v1383_v20 = vpop.permute.xlu0 %1382 }
 0x418   :  { %v1485_v44 = vmul.f32 %v3019_v32, %v1471_v39  ;;  %v1388_v1 = vmul.f32 %v2977_v7, %v1383_v20 }
 0x419   :  { %2469 = vset.pattern.permute.xlu1 %v2552_v58 }
 0x41a   :  { %v1501_v38 = vadd.f32 %v1485_v44, %v1465_v17  ;;  %1671 = vperm.xlu1 %2469, %v3303_v3  }
 0x41c   :  { %v1509_v49 = vadd.f32 %v1501_v38, %v1497_v47  ;;  %v1343_v50 = vpop.permute.xlu1 %1342  ;;  %v1443_v63 = vpop.permute.xlu0 %1442 }
 0x41d   :  { %v1348_v8 = vmul.f32 %v3001_v27, %v1343_v50  ;;  %v1448_v12 = vmul.f32 %v2995_v23, %v1443_v63 }
 0x41e   :  { %v1513_v35 = vadd.f32 %v1509_v49, %v1505_v16  ;;  %2472 = vset.pattern.permute.xlu1 %v2545_v9  ;;  %v53_v49 = vld [vmem:[%s3693_s0 + $0xf0] sm:$0xff] }
 0x41f   :  { %2245 = vmatprep.mubr.msk.f32.mxu1 %vm63_vm1, %v53_v49  ;;  %v3448_v49 = vld [vmem:[%s3694_s3 + $0x5] ss:$0 sm:$0xff] }
 0x420   :  { %v1517_v18 = vadd.f32 %v1513_v35, %v331_v15  ;;  %2246 = vmatmul.mubr.msk.f32.gmra.mrb[12].mxu1 %vm63_vm1, %v54_v33 }
 0x421   :  { %v1363_v19 = vpop.permute.xlu1 %1362 }
 0x422   :  { %v3333_v51 = vmax.f32 %v1517_v18, 0.0  ;;  %v1368_v2 = vmul.f32 %v2989_v21, %v1363_v19 }
 0x424   :  { %1567 = vperm.xlu1 %2472, %v3333_v51   ;;  %1547 = vperm.xlu0 %2471, %v3333_v51   ;;  %v1492_v34 = vadd.f32 %v1368_v2, %v1348_v8 }
 0x426   :  { %v1403_v13 = vpop.permute.xlu1 %1402 }
 0x427   :  { %v1408_v62 = vmul.f32 %v2983_v11, %v1403_v13 }
 0x428   :  { %2473 = vset.pattern.permute.xlu1 %v2548_v54  ;;  %2474 = vset.pattern.permute.xlu0 %v2547_v53 }
 0x429   :  { %1587 = vperm.xlu1 %2473, %v3333_v51   ;;  %1607 = vperm.xlu0 %2474, %v3333_v51   ;;  %v1496_v24 = vadd.f32 %v1408_v62, %v1388_v1 }
 0x42b   :  { %v1423_v5 = vpop.permute.xlu1 %1422  ;;  %v1508_v39 = vadd.f32 %v1496_v24, %v1492_v34 }
 0x42c   :  { %v1428_v6 = vmul.f32 %v3013_v31, %v1423_v5 }
 0x42d   :  { %2475 = vset.pattern.permute.xlu1 %v2550_v56  ;;  %2477 = vset.pattern.permute.xlu0 %v2552_v58 }
 0x42e   :  { %1627 = vperm.xlu1 %2475, %v3333_v51   ;;  %1667 = vperm.xlu0 %2477, %v3333_v51   ;;  %v1500_v36 = vadd.f32 %v1448_v12, %v1428_v6 }
 0x430   :  { %v1463_v60 = vpop.permute.xlu1 %1462 }
 0x431   :  { %v1468_v25 = vmul.f32 %v3007_v29, %v1463_v60 }
 0x432   :  { %2476 = vset.pattern.permute.xlu1 %v2549_v55  ;;  %2479 = vset.pattern.permute.xlu0 %v2546_v10 }
 0x433   :  { %1647 = vperm.xlu1 %2476, %v3333_v51  }
 0x435   :  { %v1483_v0 = vpop.permute.xlu1 %1482 }
 0x436   :  { %v1488_v42 = vmul.f32 %v3019_v32, %v1483_v0  ;;  %v3403_v0 = vpop.f32.mrb[8].mxu1 }
 0x437   :  { %2478 = vset.pattern.permute.xlu1 %v2551_v57 }
 0x438   :  { %v1504_v37 = vadd.f32 %v1488_v42, %v1468_v25  ;;  %1687 = vperm.xlu1 %2478, %v3333_v51  }
 0x439   :  { %v1359_v38 = vpop.permute.xlu0 %1358 }
 0x43a   :  { %v1512_v40 = vadd.f32 %v1504_v37, %v1500_v36  ;;  %v1339_v17 = vpop.permute.xlu1 %1338  ;;  %v1367_v13 = vmul.f32 %v2989_v21, %v1359_v38  ;;  %v3424_v37 = vld [vmem:[%s3694_s3 + $0x3] ss:$0 sm:$0xff] }
 0x43b   :  { %v1347_v5 = vmul.f32 %v3001_v27, %v1339_v17 }
 0x43c   :  { %v1516_v44 = vadd.f32 %v1512_v40, %v1508_v39  ;;  %2480 = vset.pattern.permute.xlu1 %v2545_v9 }
 0x43d   :  { %v1491_v6 = vadd.f32 %v1367_v13, %v1347_v5  ;;  %v3466_v5 = vld [vmem:[%s3694_s3 + $0x6] ss:$0 sm:$0xff] }
 0x43e   :  { %v1520_v45 = vadd.f32 %v1516_v44, %v346_v41  ;;  %v1419_v15 = vpop.permute.xlu0 %1418  ;;  %v3430_v41 = vld [vmem:[%s3694_s3] ss:$0 sm:$0xff]  ;;  %v3436_v44 = vld [vmem:[%s3694_s3 + $0x1] ss:$0 sm:$0xff] }
 0x43f   :  { %v1379_v47 = vpop.permute.xlu1 %1378 }
 0x440   :  { %v3363_v16 = vmax.f32 %v1520_v45, 0.0  ;;  %v1387_v20 = vmul.f32 %v2977_v7, %v1379_v47  ;;  %v3442_v47 = vld [vmem:[%s3694_s3 + $0x2] ss:$0 sm:$0xff] }
 0x442   :  { %1579 = vperm.xlu1 %2480, %v3363_v16   ;;  %1559 = vperm.xlu0 %2479, %v3363_v16  }
 0x443   :  { %v1479_v19 = vpop.permute.xlu0 %1478 }
 0x444   :  { %v1399_v50 = vpop.permute.xlu1 %1398  ;;  %v1487_v63 = vmul.f32 %v3019_v32, %v1479_v19  ;;  %v3460_v19 = vld [vmem:[%s3694_s3 + $0x7] ss:$0 sm:$0xff] }
 0x445   :  { %v1407_v18 = vmul.f32 %v2983_v11, %v1399_v50  ;;  %v1427_v11 = vmul.f32 %v3013_v31, %v1419_v15  ;;  %v3454_v15 = vld [vmem:[%s3694_s3 + $0x4] ss:$0 sm:$0xff] }
 0x446   :  { %2481 = vset.pattern.permute.xlu1 %v2548_v54  ;;  %2482 = vset.pattern.permute.xlu0 %v2547_v53 }
 0x447   :  { %1599 = vperm.xlu1 %2481, %v3363_v16   ;;  %1619 = vperm.xlu0 %2482, %v3363_v16   ;;  %v1495_v1 = vadd.f32 %v1407_v18, %v1387_v20 }
 0x449   :  { %v1439_v35 = vpop.permute.xlu1 %1438  ;;  %v1507_v7 = vadd.f32 %v1495_v1, %v1491_v6 }
 0x44a   :  { %v1447_v60 = vmul.f32 %v2995_v23, %v1439_v35  ;;  %v341_v23 = vadd.f32 %v3047_v4, %v3269_v30  ;;  %v3412_v30 = vpop.f32.mrb[9].mxu1 }
 0x44b   :  { %2483 = vset.pattern.permute.xlu1 %v2550_v56  ;;  %2485 = vset.pattern.permute.xlu0 %v2552_v58 }
 0x44c   :  { %1639 = vperm.xlu1 %2483, %v3363_v16   ;;  %1679 = vperm.xlu0 %2485, %v3363_v16   ;;  %v1499_v21 = vadd.f32 %v1447_v60, %v1427_v11 }
 0x44e   :  { %v1459_v62 = vpop.permute.xlu1 %1458 }
 0x44f   :  { %v1467_v2 = vmul.f32 %v3007_v29, %v1459_v62 }
 0x450   :  { %2484 = vset.pattern.permute.xlu1 %v2549_v55  ;;  %2489 = vset.pattern.permute.xlu0 %v2548_v54 }
 0x451   :  { %v1503_v8 = vadd.f32 %v1487_v63, %v1467_v2  ;;  %1659 = vperm.xlu1 %2484, %v3363_v16   ;;  %v356_v2 = vadd.f32 %v3047_v4, %v3331_v52 }
 0x453   :  { %v1511_v27 = vadd.f32 %v1503_v8, %v1499_v21 }
 0x455   :  { %v1515_v31 = vadd.f32 %v1511_v27, %v1507_v7  ;;  %2486 = vset.pattern.permute.xlu1 %v2551_v57 }
 0x456   :  { %1699 = vperm.xlu1 %2486, %v3363_v16  }
 0x457   :  { %v1519_v29 = vadd.f32 %v1515_v31, %v341_v23 }
 0x459   :  { %v3398_v32 = vmax.f32 %v1519_v29, 0.0 }
 0x45a   :  { %2487 = vset.pattern.permute.xlu1 %v2546_v10 }
 0x45b   :  { %1595 = vperm.xlu0 %2489, %v3398_v32   ;;  %1555 = vperm.xlu1 %2487, %v3398_v32  }
 0x45f   :  { %2492 = vset.pattern.permute.xlu0 %v2549_v55  ;;  %2488 = vset.pattern.permute.xlu1 %v2545_v9 }
 0x460   :  { %1655 = vperm.xlu0 %2492, %v3398_v32   ;;  %1575 = vperm.xlu1 %2488, %v3398_v32  }
 0x464   :  { %2490 = vset.pattern.permute.xlu1 %v2547_v53  ;;  %2497 = vset.pattern.permute.xlu0 %v2548_v54 }
 0x465   :  { %1615 = vperm.xlu1 %2490, %v3398_v32  }
 0x469   :  { %2491 = vset.pattern.permute.xlu1 %v2550_v56 }
 0x46a   :  { %1635 = vperm.xlu1 %2491, %v3398_v32  }
 0x46e   :  { %2493 = vset.pattern.permute.xlu1 %v2552_v58 }
 0x46f   :  { %1675 = vperm.xlu1 %2493, %v3398_v32  }
 0x473   :  { %2494 = vset.pattern.permute.xlu1 %v2551_v57 }
 0x474   :  { %1695 = vperm.xlu1 %2494, %v3398_v32  }
 0x478   :  { %2495 = vset.pattern.permute.xlu1 %v2546_v10 }
 0x485   :  { %v1552_v12 = vpop.permute.xlu1 %1551  ;;  %v1572_v25 = vpop.permute.xlu0 %1571 }
 0x486   :  { %v1563_v17 = vmul.f32 %v3430_v41, %v1552_v12  ;;  %v1583_v45 = vmul.f32 %v3436_v44, %v1572_v25 }
 0x488   :  { %v1707_v60 = vadd.f32 %v1583_v45, %v1563_v17 }
 0x48a   :  { %v1592_v24 = vpop.permute.xlu1 %1591  ;;  %v1632_v34 = vpop.permute.xlu0 %1631 }
 0x48b   :  { %v1603_v38 = vmul.f32 %v3442_v47, %v1592_v24  ;;  %v1643_v35 = vmul.f32 %v3454_v15, %v1632_v34 }
 0x48f   :  { %v1612_v42 = vpop.permute.xlu1 %1611  ;;  %v1692_v40 = vpop.permute.xlu0 %1691 }
 0x490   :  { %v1623_v39 = vmul.f32 %v3424_v37, %v1612_v42  ;;  %v1703_v13 = vmul.f32 %v3460_v19, %v1692_v40 }
 0x492   :  { %v1711_v18 = vadd.f32 %v1623_v39, %v1603_v38 }
 0x494   :  { %v1652_v36 = vpop.permute.xlu1 %1651  ;;  %v1723_v63 = vadd.f32 %v1711_v18, %v1707_v60 }
 0x495   :  { %v1663_v50 = vmul.f32 %v3448_v49, %v1652_v36 }
 0x497   :  { %v1715_v62 = vadd.f32 %v1663_v50, %v1643_v35 }
 0x499   :  { %v1672_v33 = vpop.permute.xlu1 %1671 }
 0x49a   :  { %v1683_v20 = vmul.f32 %v3466_v5, %v1672_v33 }
 0x49c   :  { %v1719_v11 = vadd.f32 %v1703_v13, %v1683_v20  ;;  %v3497_v13 = vld [vmem:[%s3695_s2] ss:$0 sm:$0xff]  ;;  %s2555_s2 = smov 32  }
 0x49d   :  { %v351_v20 = vadd.f32 %v3497_v13, %v3345_v61 }
 0x49e   :  { %v1727_v1 = vadd.f32 %v1719_v11, %v1715_v62 }
 0x4a0   :  { %v1731_v6 = vadd.f32 %v1727_v1, %v1723_v63  ;;  %v3508_v1 = vpop.f32.mrb[10].mxu1 }
 0x4a2   :  { %v1735_v21 = vadd.f32 %v1731_v6, %v356_v2 }
 0x4a3   :  { %v1568_v8 = vpop.permute.xlu1 %1567  ;;  %v1548_v23 = vpop.permute.xlu0 %1547 }
 0x4a4   :  { %v3471_v7 = vmax.f32 %v1735_v21, 0.0  ;;  %v1582_v25 = vmul.f32 %v3436_v44, %v1568_v8  ;;  %v1562_v42 = vmul.f32 %v3430_v41, %v1548_v23 }
 0x4a6   :  { %1808 = vperm.xlu0 %2497, %v3471_v7   ;;  %1768 = vperm.xlu1 %2495, %v3471_v7   ;;  %v1706_v38 = vadd.f32 %v1582_v25, %v1562_v42 }
 0x4a8   :  { %v1588_v27 = vpop.permute.xlu1 %1587  ;;  %v1608_v52 = vpop.permute.xlu0 %1607 }
 0x4a9   :  { %v1602_v29 = vmul.f32 %v3442_v47, %v1588_v27  ;;  %v1622_v12 = vmul.f32 %v3424_v37, %v1608_v52 }
 0x4aa   :  { %2500 = vset.pattern.permute.xlu0 %v2549_v55  ;;  %2496 = vset.pattern.permute.xlu1 %v2545_v9 }
 0x4ab   :  { %1868 = vperm.xlu0 %2500, %v3471_v7   ;;  %1788 = vperm.xlu1 %2496, %v3471_v7   ;;  %v1710_v39 = vadd.f32 %v1622_v12, %v1602_v29 }
 0x4ad   :  { %v1628_v4 = vpop.permute.xlu1 %1627  ;;  %v1668_v24 = vpop.permute.xlu0 %1667  ;;  %v1722_v35 = vadd.f32 %v1710_v39, %v1706_v38 }
 0x4ae   :  { %v1642_v40 = vmul.f32 %v3454_v15, %v1628_v4  ;;  %v1682_v17 = vmul.f32 %v3466_v5, %v1668_v24 }
 0x4af   :  { %2498 = vset.pattern.permute.xlu1 %v2547_v53  ;;  %2504 = vset.pattern.permute.xlu0 %v2545_v9 }
 0x4b0   :  { %1828 = vperm.xlu1 %2498, %v3471_v7  }
 0x4b2   :  { %v1648_v31 = vpop.permute.xlu1 %1647 }
 0x4b3   :  { %v1662_v34 = vmul.f32 %v3448_v49, %v1648_v31 }
 0x4b4   :  { %2499 = vset.pattern.permute.xlu1 %v2550_v56 }
 0x4b5   :  { %1848 = vperm.xlu1 %2499, %v3471_v7   ;;  %v1714_v50 = vadd.f32 %v1662_v34, %v1642_v40 }
 0x4b7   :  { %v1688_v36 = vpop.permute.xlu1 %1687 }
 0x4b8   :  { %v1702_v45 = vmul.f32 %v3460_v19, %v1688_v36 }
 0x4b9   :  { %2501 = vset.pattern.permute.xlu1 %v2552_v58 }
 0x4ba   :  { %v1718_v33 = vadd.f32 %v1702_v45, %v1682_v17  ;;  %1888 = vperm.xlu1 %2501, %v3471_v7  }
 0x4bc   :  { %v1726_v18 = vadd.f32 %v1718_v33, %v1714_v50  ;;  %v366_v50 = vadd.f32 %v3497_v13, %v3403_v0 }
 0x4be   :  { %v1730_v60 = vadd.f32 %v1726_v18, %v1722_v35  ;;  %2502 = vset.pattern.permute.xlu1 %v2551_v57  ;;  %v3534_v35 = vpop.f32.mrb[11].mxu1 }
 0x4bf   :  { %1908 = vperm.xlu1 %2502, %v3471_v7  }
 0x4c0   :  { %v1734_v62 = vadd.f32 %v1730_v60, %v351_v20 }
 0x4c1   :  { %v1580_v11 = vpop.permute.xlu1 %1579  ;;  %v1560_v6 = vpop.permute.xlu0 %1559 }
 0x4c2   :  { %v3503_v63 = vmax.f32 %v1734_v62, 0.0  ;;  %v1585_v52 = vmul.f32 %v3436_v44, %v1580_v11  ;;  %v1565_v31 = vmul.f32 %v3430_v41, %v1560_v6 }
 0x4c3   :  { %2503 = vset.pattern.permute.xlu1 %v2546_v10 }
 0x4c4   :  { %1784 = vperm.xlu0 %2504, %v3503_v63   ;;  %1764 = vperm.xlu1 %2503, %v3503_v63   ;;  %v1709_v36 = vadd.f32 %v1585_v52, %v1565_v31 }
 0x4c6   :  { %v1600_v2 = vpop.permute.xlu1 %1599  ;;  %v1620_v21 = vpop.permute.xlu0 %1619 }
 0x4c7   :  { %v1605_v27 = vmul.f32 %v3442_v47, %v1600_v2  ;;  %v1625_v23 = vmul.f32 %v3424_v37, %v1620_v21 }
 0x4c8   :  { %2507 = vset.pattern.permute.xlu0 %v2550_v56  ;;  %2505 = vset.pattern.permute.xlu1 %v2548_v54 }
 0x4c9   :  { %1844 = vperm.xlu0 %2507, %v3503_v63   ;;  %1804 = vperm.xlu1 %2505, %v3503_v63   ;;  %v1713_v24 = vadd.f32 %v1625_v23, %v1605_v27 }
 0x4cb   :  { %v1640_v61 = vpop.permute.xlu1 %1639  ;;  %v1680_v4 = vpop.permute.xlu0 %1679  ;;  %v1725_v17 = vadd.f32 %v1713_v24, %v1709_v36  ;;  %v361_v36 = vadd.f32 %v3497_v13, %v3412_v30 }
 0x4cc   :  { %v1645_v25 = vmul.f32 %v3454_v15, %v1640_v61  ;;  %v1685_v42 = vmul.f32 %v3466_v5, %v1680_v4 }
 0x4cd   :  { %2510 = vset.pattern.permute.xlu0 %v2551_v57  ;;  %2506 = vset.pattern.permute.xlu1 %v2547_v53 }
 0x4ce   :  { %1904 = vperm.xlu0 %2510, %v3503_v63   ;;  %1824 = vperm.xlu1 %2506, %v3503_v63  }
 0x4d0   :  { %v1660_v8 = vpop.permute.xlu1 %1659 }
 0x4d1   :  { %v1665_v29 = vmul.f32 %v3448_v49, %v1660_v8 }
 0x4d2   :  { %2508 = vset.pattern.permute.xlu1 %v2549_v55  ;;  %2512 = vset.pattern.permute.xlu0 %v2545_v9 }
 0x4d3   :  { %1864 = vperm.xlu1 %2508, %v3503_v63   ;;  %v1717_v39 = vadd.f32 %v1665_v29, %v1645_v25 }
 0x4d5   :  { %v1700_v12 = vpop.permute.xlu1 %1699 }
 0x4d6   :  { %v1705_v34 = vmul.f32 %v3460_v19, %v1700_v12 }
 0x4d7   :  { %2509 = vset.pattern.permute.xlu1 %v2552_v58 }
 0x4d8   :  { %v1721_v40 = vadd.f32 %v1705_v34, %v1685_v42  ;;  %1884 = vperm.xlu1 %2509, %v3503_v63  }
 0x4da   :  { %v1729_v45 = vadd.f32 %v1721_v40, %v1717_v39  ;;  %v1556_v38 = vpop.permute.xlu1 %1555  ;;  %v1596_v11 = vpop.permute.xlu0 %1595 }
 0x4db   :  { %v1604_v21 = vmul.f32 %v3442_v47, %v1596_v11  ;;  %v1564_v23 = vmul.f32 %v3430_v41, %v1556_v38  ;;  %v1987_v38 = vld [vmem:[%s3696_s4 + $0x18] sm:$0xff] }
 0x4dc   :  { %v1733_v33 = vadd.f32 %v1729_v45, %v1725_v17  ;;  %2511 = vset.pattern.permute.xlu1 %v2546_v10 }
 0x4de   :  { %v1737_v18 = vadd.f32 %v1733_v33, %v366_v50 }
 0x4df   :  { %v1576_v20 = vpop.permute.xlu1 %1575  ;;  %v1656_v61 = vpop.permute.xlu0 %1655 }
 0x4e0   :  { %v3536_v60 = vmax.f32 %v1737_v18, 0.0  ;;  %v1584_v8 = vmul.f32 %v3436_v44, %v1576_v20 }
 0x4e2   :  { %1796 = vperm.xlu0 %2512, %v3536_v60   ;;  %1776 = vperm.xlu1 %2511, %v3536_v60   ;;  %v1708_v12 = vadd.f32 %v1584_v8, %v1564_v23 }
 0x4e4   :  { %v1616_v62 = vpop.permute.xlu1 %1615 }
 0x4e5   :  { %v1624_v6 = vmul.f32 %v3424_v37, %v1616_v62 }
 0x4e6   :  { %2515 = vset.pattern.permute.xlu0 %v2550_v56  ;;  %2513 = vset.pattern.permute.xlu1 %v2548_v54 }
 0x4e7   :  { %1856 = vperm.xlu0 %2515, %v3536_v60   ;;  %1816 = vperm.xlu1 %2513, %v3536_v60   ;;  %v1712_v52 = vadd.f32 %v1624_v6, %v1604_v21 }
 0x4e9   :  { %v1636_v0 = vpop.permute.xlu1 %1635  ;;  %v1724_v42 = vadd.f32 %v1712_v52, %v1708_v12  ;;  %v1989_v12 = vld [vmem:[%s3696_s4 + $0x28] sm:$0xff] }
 0x4ea   :  { %v1644_v27 = vmul.f32 %v3454_v15, %v1636_v0 }
 0x4eb   :  { %2514 = vset.pattern.permute.xlu1 %v2547_v53  ;;  %2517 = vset.pattern.permute.xlu0 %v2546_v10  ;;  %v1664_v10 = vmul.f32 %v3448_v49, %v1656_v61 }
 0x4ec   :  { %1836 = vperm.xlu1 %2514, %v3536_v60  }
 0x4ed   :  { %v1716_v24 = vadd.f32 %v1664_v10, %v1644_v27 }
 0x4ee   :  { %v1676_v2 = vpop.permute.xlu1 %1675 }
 0x4ef   :  { %v1684_v31 = vmul.f32 %v3466_v5, %v1676_v2  ;;  %v376_v2 = vadd.f32 %v3497_v13, %v3508_v1  ;;  %v1988_v1 = vld [vmem:[%s3696_s4 + $0x20] sm:$0xff] }
 0x4f0   :  { %2516 = vset.pattern.permute.xlu1 %v2549_v55 }
 0x4f1   :  { %1876 = vperm.xlu1 %2516, %v3536_v60  }
 0x4f3   :  { %v1696_v4 = vpop.permute.xlu1 %1695 }
 0x4f4   :  { %v1704_v29 = vmul.f32 %v3460_v19, %v1696_v4 }
 0x4f5   :  { %2518 = vset.pattern.permute.xlu1 %v2545_v9  ;;  %v3571_v9 = vpop.f32.mrb[12].mxu1 }
 0x4f6   :  { %v1720_v25 = vadd.f32 %v1704_v29, %v1684_v31 }
 0x4f8   :  { %v1728_v34 = vadd.f32 %v1720_v25, %v1716_v24 }
 0x4fa   :  { %v1732_v39 = vadd.f32 %v1728_v34, %v1724_v42  ;;  %v2278_v34 = vpack.c.bf16 %v1989_v12, %v1988_v1 }
 0x4fc   :  { %v1736_v40 = vadd.f32 %v1732_v39, %v361_v36 }
 0x4fe   :  { %v1740_v17 = vmax.f32 %v1736_v40, 0.0 }
 0x500   :  { %1792 = vperm.xlu1 %2518, %v1740_v17   ;;  %1772 = vperm.xlu0 %2517, %v1740_v17  }
 0x504   :  { %2519 = vset.pattern.permute.xlu1 %v2548_v54  ;;  %2520 = vset.pattern.permute.xlu0 %v2547_v53  ;;  %v3574_v53 = vpop.f32.mrb[13].mxu1 }
 0x505   :  { %1812 = vperm.xlu1 %2519, %v1740_v17   ;;  %1832 = vperm.xlu0 %2520, %v1740_v17  }
 0x509   :  { %2521 = vset.pattern.permute.xlu1 %v2550_v56  ;;  %2523 = vset.pattern.permute.xlu0 %v2552_v58 }
 0x50a   :  { %1852 = vperm.xlu1 %2521, %v1740_v17   ;;  %1892 = vperm.xlu0 %2523, %v1740_v17  }
 0x50e   :  { %2522 = vset.pattern.permute.xlu1 %v2549_v55  ;;  %2526 = vset.pattern.permute.xlu0 %v2551_v57 }
 0x50f   :  { %1872 = vperm.xlu1 %2522, %v1740_v17   ;;  %1916 = vperm.xlu0 %2526, %v3536_v60  }
 0x513   :  { %2524 = vset.pattern.permute.xlu1 %v2551_v57  ;;  %1312 = vrot.lane.b32.xlu0 %v3194_v14, %s2555_s2 }
 0x514   :  { %1912 = vperm.xlu1 %2524, %v1740_v17  }
 0x517   :  { %1529 = vrot.lane.b32.xlu0 %v3333_v51, %s2556_s16 }
 0x518   :  { %2525 = vset.pattern.permute.xlu1 %v2552_v58 }
 0x519   :  { %1896 = vperm.xlu1 %2525, %v3536_v60  }
 0x51b   :  { %1746 = vrot.lane.b32.xlu0 %v3503_v63, %s2557_s17  ;;  %v1986_v63 = vld [vmem:[%s3696_s4 + $0x10] sm:$0xff] }
 0x51c   :  { %v2274_v20 = vpack.c.bf16 %v1987_v38, %v1986_v63 }
 0x51d   :  { %1095 = vrot.lane.b32.xlu1 %v3053_v22, %s2558_s18 }
 0x51f   :  { %1748 = vrot.lane.b32.xlu0 %v3471_v7, %s2557_s17  ;;  %v1985_v7 = vld [vmem:[%s3696_s4 + $0x8] sm:$0xff] }
 0x521   :  { %1097 = vrot.lane.b32.xlu1 %v3024_v48, %s2558_s18 }
 0x523   :  { %1101 = vrot.lane.b32.xlu0 %v3096_v59, %s2558_s18 }
 0x525   :  { %v1769_v54 = vpop.permute.xlu1 %1768  ;;  %1314 = vrot.lane.b32.xlu1 %v3167_v28, %s2555_s2  ;;  %v1809_v58 = vpop.permute.xlu0 %1808 }
 0x526   :  { %v1820_v28 = vmul.f32 %v3442_v47, %v1809_v58 }
 0x527   :  { %1533 = vrot.lane.b32.xlu0 %v3398_v32, %s2556_s16 }
 0x529   :  { %1531 = vrot.lane.b32.xlu1 %v3303_v3, %s2556_s16 }
 0x52a   :  { %v1789_v55 = vpop.permute.xlu1 %1788  ;;  %v1869_v59 = vpop.permute.xlu0 %1868 }
 0x52b   :  { %1750 = vrot.lane.b32.xlu0 %v1740_v17, %s2557_s17  ;;  %v1800_v14 = vmul.f32 %v3436_v44, %v1789_v55  ;;  %v1990_v55 = vld [vmem:[%s3696_s4 + $0x30] sm:$0xff] }
 0x52d   :  { %1099 = vrot.lane.b32.xlu1 %v3131_v43, %s2558_s18  ;;  %v1780_v43 = vmul.f32 %v3430_v41, %v1769_v54 }
 0x52f   :  { %v1829_v56 = vpop.permute.xlu1 %1828  ;;  %v1924_v50 = vadd.f32 %v1800_v14, %v1780_v43  ;;  %v371_v14 = vadd.f32 %v3497_v13, %v3534_v35 }
 0x530   :  { %v1840_v22 = vmul.f32 %v3424_v37, %v1829_v56  ;;  %v1991_v56 = vld [vmem:[%s3696_s4 + $0x38] sm:$0xff] }
 0x531   :  { %1316 = vrot.lane.b32.xlu1 %v3262_v26, %s2555_s2  ;;  %v1880_v26 = vmul.f32 %v3448_v49, %v1869_v59 }
 0x532   :  { %v1928_v32 = vadd.f32 %v1840_v22, %v1820_v28  ;;  %v2282_v22 = vpack.c.bf16 %v1991_v56, %v1990_v55 }
 0x534   :  { %v1849_v57 = vpop.permute.xlu1 %1848  ;;  %v1940_v62 = vadd.f32 %v1928_v32, %v1924_v50 }
 0x535   :  { %1318 = vrot.lane.b32.xlu1 %v3232_v46, %s2555_s2  ;;  %v1860_v3 = vmul.f32 %v3454_v15, %v1849_v57 }
 0x537   :  { %v1932_v33 = vadd.f32 %v1880_v26, %v1860_v3 }
 0x539   :  { %v1889_v48 = vpop.permute.xlu1 %1888  ;;  %1535 = vrot.lane.b32.xlu1 %v3363_v16, %s2556_s16  ;;  %v1984_v16 = vld [vmem:[%s3696_s4] sm:$0xff] }
 0x53a   :  { %v1900_v46 = vmul.f32 %v3466_v5, %v1889_v48  ;;  %v2270_v45 = vpack.c.bf16 %v1985_v7, %v1984_v16 }
 0x53c   :  { %2271 = vmatprep.subr.bf16.mxu1 %v2270_v45 }
 0x53d   :  { %2273 = vmatpush3.bf16.msra.mxu1 %v2270_v45 }
 0x53e   :  { %v1909_v51 = vpop.permute.xlu1 %1908  ;;  %2275 = vmatprep.subr.bf16.mxu1 %v2274_v20 }
 0x53f   :  { %v1920_v30 = vmul.f32 %v3460_v19, %v1909_v51 }
 0x541   :  { %v1936_v18 = vadd.f32 %v1920_v30, %v1900_v46  ;;  %2277 = vmatpush3.bf16.msra.mxu1 %v2274_v20 }
 0x542   :  { %2279 = vmatprep.subr.bf16.mxu1 %v2278_v34 }
 0x543   :  { %v1944_v0 = vadd.f32 %v1936_v18, %v1932_v33  ;;  %v1765_v11 = vpop.permute.xlu1 %1764  ;;  %v1785_v8 = vpop.permute.xlu0 %1784 }
 0x544   :  { %v1779_v31 = vmul.f32 %v3430_v41, %v1765_v11  ;;  %v1799_v24 = vmul.f32 %v3436_v44, %v1785_v8 }
 0x545   :  { %v1948_v6 = vadd.f32 %v1944_v0, %v1940_v62  ;;  %2281 = vmatpush3.bf16.msra.mxu1 %v2278_v34 }
 0x546   :  { %v1923_v57 = vadd.f32 %v1799_v24, %v1779_v31  ;;  %2283 = vmatprep.subr.bf16.mxu1 %v2282_v22 }
 0x547   :  { %v1952_v61 = vadd.f32 %v1948_v6, %v376_v2 }
 0x548   :  { %v1805_v21 = vpop.permute.xlu1 %1804  ;;  %v1845_v4 = vpop.permute.xlu0 %1844 }
 0x549   :  { %v1956_v27 = vmax.f32 %v1952_v61, 0.0  ;;  %v1819_v25 = vmul.f32 %v3442_v47, %v1805_v21  ;;  %v1859_v39 = vmul.f32 %v3454_v15, %v1845_v4  ;;  %2285 = vmatpush3.bf16.msra.mxu1 %v2282_v22 }
 0x54b   :  { %1965 = vrot.lane.b32.xlu0 %v1956_v27, %s2559_s26 }
 0x54d   :  { %v1825_v23 = vpop.permute.xlu1 %1824  ;;  %v1905_v29 = vpop.permute.xlu0 %1904 }
 0x54e   :  { %v1839_v52 = vmul.f32 %v3424_v37, %v1825_v23  ;;  %v1919_v17 = vmul.f32 %v3460_v19, %v1905_v29 }
 0x550   :  { %v1927_v40 = vadd.f32 %v1839_v52, %v1819_v25 }
 0x552   :  { %v1865_v10 = vpop.permute.xlu1 %1864  ;;  %v1939_v59 = vadd.f32 %v1927_v40, %v1923_v57 }
 0x553   :  { %v1879_v42 = vmul.f32 %v3448_v49, %v1865_v10 }
 0x555   :  { %v1931_v58 = vadd.f32 %v1879_v42, %v1859_v39  ;;  %v381_v39 = vadd.f32 %v3497_v13, %v3574_v53 }
 0x557   :  { %v1885_v36 = vpop.permute.xlu1 %1884 }
 0x558   :  { %v1899_v54 = vmul.f32 %v3466_v5, %v1885_v36 }
 0x55a   :  { %v1935_v48 = vadd.f32 %v1919_v17, %v1899_v54 }
 0x55c   :  { %v1943_v28 = vadd.f32 %v1935_v48, %v1931_v58 }
 0x55e   :  { %v1947_v3 = vadd.f32 %v1943_v28, %v1939_v59 }
 0x560   :  { %v1951_v43 = vadd.f32 %v1947_v3, %v371_v14 }
 0x561   :  { %v1777_v26 = vpop.permute.xlu1 %1776  ;;  %v1797_v46 = vpop.permute.xlu0 %1796 }
 0x562   :  { %v1955_v51 = vmax.f32 %v1951_v43, 0.0  ;;  %v1782_v1 = vmul.f32 %v3430_v41, %v1777_v26  ;;  %v1802_v12 = vmul.f32 %v3436_v44, %v1797_v46 }
 0x564   :  { %1963 = vrot.lane.b32.xlu1 %v1955_v51, %s2559_s26 }
 0x566   :  { %v1817_v32 = vpop.permute.xlu1 %1816  ;;  %v1857_v16 = vpop.permute.xlu0 %1856 }
 0x567   :  { %v1822_v24 = vmul.f32 %v3442_v47, %v1817_v32 }
 0x568   :  { %1752 = vrot.lane.b32.xlu1 %v3536_v60, %s2557_s17 }
 0x56b   :  { %v1837_v30 = vpop.permute.xlu1 %1836 }
 0x56c   :  { %v1842_v4 = vmul.f32 %v3424_v37, %v1837_v30 }
 0x56e   :  { %v1930_v40 = vadd.f32 %v1842_v4, %v1822_v24 }
 0x570   :  { %v1877_v7 = vpop.permute.xlu1 %1876 }
 0x571   :  { %v1882_v25 = vmul.f32 %v3448_v49, %v1877_v7 }
 0x57f   :  { %v1793_v63 = vpop.permute.xlu1 %1792  ;;  %v1773_v45 = vpop.permute.xlu0 %1772 }
 0x580   :  { %v1801_v60 = vmul.f32 %v3436_v44, %v1793_v63  ;;  %v1781_v11 = vmul.f32 %v3430_v41, %v1773_v45  ;;  %v1926_v44 = vadd.f32 %v1802_v12, %v1782_v1 }
 0x582   :  { %v1925_v10 = vadd.f32 %v1801_v60, %v1781_v11  ;;  %v1942_v58 = vadd.f32 %v1930_v40, %v1926_v44 }
 0x584   :  { %v1813_v38 = vpop.permute.xlu1 %1812  ;;  %v1833_v35 = vpop.permute.xlu0 %1832 }
 0x585   :  { %v1821_v62 = vmul.f32 %v3442_v47, %v1813_v38  ;;  %v1841_v0 = vmul.f32 %v3424_v37, %v1833_v35  ;;  %v1862_v37 = vmul.f32 %v3454_v15, %v1857_v16 }
 0x587   :  { %v1929_v21 = vadd.f32 %v1841_v0, %v1821_v62  ;;  %v1934_v47 = vadd.f32 %v1882_v25, %v1862_v37 }
 0x589   :  { %v1853_v50 = vpop.permute.xlu1 %1852  ;;  %v1893_v33 = vpop.permute.xlu0 %1892  ;;  %v1941_v42 = vadd.f32 %v1929_v21, %v1925_v10 }
 0x58a   :  { %v1861_v8 = vmul.f32 %v3454_v15, %v1853_v50  ;;  %v1901_v27 = vmul.f32 %v3466_v5, %v1893_v33 }
 0x58e   :  { %v1873_v18 = vpop.permute.xlu1 %1872  ;;  %v1917_v20 = vpop.permute.xlu0 %1916 }
 0x58f   :  { %v1881_v2 = vmul.f32 %v3448_v49, %v1873_v18  ;;  %v1922_v17 = vmul.f32 %v3460_v19, %v1917_v20  ;;  %v2148_v18 = vld [vmem:[%s3697_s5] ss:$0 sm:$0xff] }
 0x591   :  { %v1933_v52 = vadd.f32 %v1881_v2, %v1861_v8 }
 0x592   :  { %v1313_v6 = vpop.permute.xlu0 %1312 }
 0x593   :  { %v1913_v61 = vpop.permute.xlu1 %1912 }
 0x594   :  { %v1921_v23 = vmul.f32 %v3460_v19, %v1913_v61 }
 0x596   :  { %v1937_v31 = vadd.f32 %v1921_v23, %v1901_v27  ;;  %v1530_v29 = vpop.permute.xlu0 %1529 }
 0x598   :  { %v1945_v34 = vadd.f32 %v1937_v31, %v1933_v52  ;;  %v1897_v36 = vpop.permute.xlu1 %1896 }
 0x599   :  { %v1902_v54 = vmul.f32 %v3466_v5, %v1897_v36  ;;  %v386_v5 = vadd.f32 %v3497_v13, %v3571_v9 }
 0x59a   :  { %v1949_v41 = vadd.f32 %v1945_v34, %v1941_v42  ;;  %v1747_v55 = vpop.permute.xlu0 %1746 }
 0x59b   :  { %v1938_v56 = vadd.f32 %v1922_v17, %v1902_v54 }
 0x59c   :  { %v1953_v49 = vadd.f32 %v1949_v41, %v381_v39  ;;  %v1096_v57 = vpop.permute.xlu1 %1095 }
 0x59d   :  { %v1946_v48 = vadd.f32 %v1938_v56, %v1934_v47  ;;  %1108 = vst.msk [vmem:[#allocation2] sm:$0xff] %vm1107_vm5, %v1096_v57 }
 0x59e   :  { %v1957_v15 = vmax.f32 %v1953_v49, 0.0  ;;  %1325 = vst.msk [vmem:[#allocation2] sm:$0xff] %vm1324_vm6, %v1313_v6  ;;  %v1749_v19 = vpop.permute.xlu0 %1748 }
 0x59f   :  { %v1950_v53 = vadd.f32 %v1946_v48, %v1942_v58  ;;  %1542 = vst.msk [vmem:[#allocation2] sm:$0xff] %vm1541_vm7, %v1530_v29 }
 0x5a0   :  { %v1098_v22 = vpop.permute.xlu1 %1097  ;;  %1967 = vrot.lane.b32.xlu0 %v1957_v15, %s2559_s26  ;;  %1759 = vst.msk [vmem:[#allocation2] sm:$0xff] %vm1758_vm8, %v1747_v55 }
 0x5a1   :  { %1109 = vst.msk [vmem:[#allocation2 + $0x8] sm:$0xff] %vm1107_vm5, %v1098_v22  ;;  %v1954_v59 = vadd.f32 %v1950_v53, %v386_v5 }
 0x5a2   :  { %v1102_v28 = vpop.permute.xlu0 %1101 }
 0x5a3   :  { %1111 = vst.msk [vmem:[#allocation2 + $0x18] sm:$0xff] %vm1107_vm5, %v1102_v28  ;;  %v1958_v14 = vmax.f32 %v1954_v59, 0.0 }
 0x5a4   :  { %v1315_v3 = vpop.permute.xlu1 %1314 }
 0x5a5   :  { %1326 = vst.msk [vmem:[#allocation2 + $0x8] sm:$0xff] %vm1324_vm6, %v1315_v3  ;;  %1969 = vrot.lane.b32.xlu1 %v1958_v14, %s2559_s26 }
 0x5a6   :  { %v1534_v9 = vpop.permute.xlu0 %1533 }
 0x5a8   :  { %v1532_v13 = vpop.permute.xlu1 %1531 }
 0x5a9   :  { %1543 = vst.msk [vmem:[#allocation2 + $0x8] sm:$0xff] %vm1541_vm7, %v1532_v13 }
 0x5aa   :  { %1760 = vst.msk [vmem:[#allocation2 + $0x8] sm:$0xff] %vm1758_vm8, %v1749_v19  ;;  %v1751_v26 = vpop.permute.xlu0 %1750 }
 0x5ac   :  { %v1100_v43 = vpop.permute.xlu1 %1099 }
 0x5ad   :  { %1110 = vst.msk [vmem:[#allocation2 + $0x10] sm:$0xff] %vm1107_vm5, %v1100_v43 }
 0x5b0   :  { %v1317_v51 = vpop.permute.xlu1 %1316 }
 0x5b1   :  { %1327 = vst.msk [vmem:[#allocation2 + $0x10] sm:$0xff] %vm1324_vm6, %v1317_v51 }
 0x5b2   :  { %1544 = vst.msk [vmem:[#allocation2 + $0x10] sm:$0xff] %vm1541_vm7, %v1534_v9 }
 0x5b3   :  { %1761 = vst.msk [vmem:[#allocation2 + $0x10] sm:$0xff] %vm1758_vm8, %v1751_v26 }
 0x5b4   :  { %v1319_v32 = vpop.permute.xlu1 %1318 }
 0x5b5   :  { %1328 = vst.msk [vmem:[#allocation2 + $0x18] sm:$0xff] %vm1324_vm6, %v1319_v32 }
 0x5b8   :  { %v1536_v46 = vpop.permute.xlu1 %1535 }
 0x5b9   :  { %1545 = vst.msk [vmem:[#allocation2 + $0x18] sm:$0xff] %vm1541_vm7, %v1536_v46 }
 0x5bd   :  { %v1966_v30 = vpop.permute.xlu0 %1965 }
 0x5be   :  { %1977 = vst.msk [vmem:[#allocation2 + $0x8] sm:$0xff] %vm1975_vm9, %v1966_v30 }
 0x5c5   :  { %v1981_v45 = vld [vmem:[#allocation2 + $0x8] sm:$0xff] }
 0x5d6   :  { %v1964_v16 = vpop.permute.xlu1 %1963 }
 0x5d7   :  { %1976 = vst.msk [vmem:[#allocation2] sm:$0xff] %vm1975_vm9, %v1964_v16 }
 0x5da   :  { %v1753_v7 = vpop.permute.xlu1 %1752 }
 0x5db   :  { %1762 = vst.msk [vmem:[#allocation2 + $0x18] sm:$0xff] %vm1758_vm8, %v1753_v7 }
 0x5de   :  { %v1980_v63 = vld [vmem:[#allocation2] sm:$0xff] }
 0x5df   :  { %2264 = vmatprep.mubr.msk.f32.mxu1 %vm1999_vm10, %v1980_v63 }
 0x5e0   :  { %2265 = vmatmul.mubr.msk.f32.vlgmr.msra.gmra.mrb[14].mxu1 %vm1999_vm10, %v1981_v45 }
 0x612   :  { %v1968_v38 = vpop.permute.xlu0 %1967 }
 0x613   :  { %1978 = vst.msk [vmem:[#allocation2 + $0x10] sm:$0xff] %vm1975_vm9, %v1968_v38 }
 0x617   :  { %v1970_v35 = vpop.permute.xlu1 %1969 }
 0x618   :  { %1979 = vst.msk [vmem:[#allocation2 + $0x18] sm:$0xff] %vm1975_vm9, %v1970_v35 }
 0x61a   :  { %v1982_v50 = vld [vmem:[#allocation2 + $0x10] sm:$0xff] }
 0x61b   :  { %2267 = vmatprep.mubr.msk.f32.mxu1 %vm1999_vm10, %v1982_v50 }
 0x61f   :  { %v1983_v33 = vld [vmem:[#allocation2 + $0x18] sm:$0xff] }
 0x620   :  { %2268 = vmatmul.mubr.msk.f32.gmra.mrb[16].mxu1 %vm1999_vm10, %v1983_v33 }
 0x6b3   :  { %v2266_v20 = vpop.f32.mrb[14].mxu1 }
 0x6b4   :  { %v2084_v62 = vadd.f32 %v2266_v20, %v2148_v18  ;;  %v2078_v0 = vpop.f32.mrb[15].mxu1 }
 0x6b5   :  { %v2079_v60 = vadd.f32 %v2148_v18, %v2078_v0 }
 0x6b6   :  { %2099 = vst.msk [vmem:[%s3698_s6 + $0x8] sm:$0xff] %vm2097_vm11, %v2084_v62 }
 0x6b7   :  { %2098 = vst.msk [vmem:[%s3698_s6] sm:$0xff] %vm2097_vm11, %v2079_v60 }
 0x6f3   :  { %v2269_v11 = vpop.f32.mrb[16].mxu1 }
 0x6f4   :  { %v2094_v2 = vadd.f32 %v2269_v11, %v2148_v18  ;;  %v2088_v6 = vpop.f32.mrb[17].mxu1 }
 0x6f5   :  { %v2089_v61 = vadd.f32 %v2148_v18, %v2088_v6 }
 0x6f6   :  { %2101 = vst.msk [vmem:[%s3698_s6 + $0x18] sm:$0xff] %vm2097_vm11, %v2094_v2 }
 0x6f7   :  { %2100 = vst.msk [vmem:[%s3698_s6 + $0x10] sm:$0xff] %vm2097_vm11, %v2089_v61 }

</bundles_post_ra>
